<compile_context>
chip_gen: v7x
topology: tpu7x:2x2x1
jax: 0.10.0
libtpu: 0.0.40
codegen_flags: <defaults>
</compile_context>

<pallas_src>
import functools

import jax
import jax.numpy as jnp
from jax import lax
from jax.experimental import pallas as pl
from jax.experimental.pallas import tpu as pltpu


def _round_up(x, m):
    return (x + m - 1) // m * m


def _vmem_capacity_bytes():
    try:
        return int(pltpu.get_tpu_info().vmem_capacity_bytes)
    except Exception:
        return 64 * 1024 * 1024  # assume smallest per-core VMEM (v7x)


def _cx_kernel(i_ref, t_ref, out_ref, *, b, h, s_valid, tile_rows,
               last_row_start, mask_rows, mask_cols):
    """Row-tiled contextual-loss body.

    i_ref  : (1, TI, C)       normalized I block (I spatial rows on sublanes)
    t_ref  : (1, C, Sp)       normalized T for this batch element (resident over ti)
    out_ref: (1, 1, 8, Sp)    f32 per-(batch, split) column-max slab, VMEM-resident
                              across the row-tile axis (accumulator pattern)
    """
    split = pl.program_id(1)
    ti = pl.program_id(2)

    @pl.when(ti == 0)
    def _():
        out_ref[...] = jnp.full(out_ref.shape, -jnp.inf, dtype=out_ref.dtype)

    I = i_ref[0]                       # [TI, C]
    T = t_ref[0]                       # [C, Sp]
    sp = T.shape[1]

    # cosine similarity block on the MXU (f32 accumulation)
    cos = jnp.dot(I, T, preferred_element_type=jnp.float32)        # [TI, Sp]

    # column validity at broadcastable (1, Sp) (T was zero-padded to Sp columns)
    if mask_cols:
        col_valid = lax.broadcasted_iota(jnp.int32, (1, sp), 1) < s_valid
        cos_for_max = jnp.where(col_valid, cos, -jnp.inf)
    else:
        col_valid = None
        cos_for_max = cos

    # _create_using_dotP + _calculate_relative_distance, folded:
    #   raw      = max((1 - cos)/2, 0)
    #   row_min  = min_j raw = 0.5 * max(0, 1 - max_j cos)
    #   exp((b - raw/(row_min+eps))/h) = exp(b/h - max(1-cos,0) * k_row)
    row_max_cos = jnp.max(cos_for_max, axis=-1, keepdims=True)      # [TI, 1]
    row_min_raw = 0.5 * jnp.maximum(1.0 - row_max_cos, 0.0)
    k_row = 0.5 * pl.reciprocal(h * (row_min_raw + 1e-5), approx=False)

    x = jnp.maximum(1.0 - cos, 0.0)
    e = jnp.exp((b / h) - x * k_row)                                 # [TI, Sp]

    e_sum_src = jnp.where(col_valid, e, 0.0) if mask_cols else e
    row_sum = jnp.sum(e_sum_src, axis=-1, keepdims=True)             # [TI, 1]
    cs = e * pl.reciprocal(row_sum, approx=False)                    # [TI, Sp]

    def _accumulate(vals):
        # sublane-aligned [TI,Sp] -> [8,Sp] max (static 8-row slices, VPU only),
        # then fold into the VMEM-resident output slab.
        m = vals[0:8]
        for g in range(1, tile_rows // 8):
            m = jnp.maximum(m, vals[g * 8:(g + 1) * 8])
        acc = out_ref[...]
        out_ref[...] = jnp.maximum(acc, m.reshape(acc.shape))

    if mask_rows:
        # Padding rows only exist in the globally-last row tile.
        is_pad_tile = jnp.logical_and(split == pl.num_programs(1) - 1,
                                      ti == pl.num_programs(2) - 1)

        @pl.when(jnp.logical_not(is_pad_tile))
        def _():
            _accumulate(cs)

        @pl.when(is_pad_tile)
        def _():
            local = lax.broadcasted_iota(jnp.int32, (tile_rows, 1), 0)
            neg_row = jnp.where(last_row_start + local < s_valid, 0.0, -jnp.inf)
            _accumulate(cs + neg_row)
    else:
        _accumulate(cs)


def cx_loss_layer(I_feat, T_feat, b=1.0, h=0.1, operand_dtype=jnp.bfloat16):
    """calculate_CX_Loss (cosine distance) for one feature layer. NCHW inputs."""
    N, C, H, W = I_feat.shape
    S = H * W

    # ---- preprocessing (fused by XLA under jit): center + L2 norm in f32 ----
    # _centered_by_T
    mean_T = jnp.mean(T_feat.astype(jnp.float32), axis=(0, 2, 3), keepdims=True)
    I_c = I_feat.astype(jnp.float32) - mean_T
    T_c = T_feat.astype(jnp.float32) - mean_T
    # _normalized_L2_channelwise (no eps, matching the PyTorch reference)
    I_n = I_c * lax.rsqrt(jnp.sum(I_c * I_c, axis=1, keepdims=True))
    T_n = T_c * lax.rsqrt(jnp.sum(T_c * T_c, axis=1, keepdims=True))

    # layouts: I as [N, S, C] (no in-kernel LHS transpose), T as [N, C, S]
    I_sc = jnp.transpose(I_n.reshape(N, C, S), (0, 2, 1))
    T_cs = T_n.reshape(N, C, S)

    sp_cols = _round_up(S, 128)
    op_bytes = jnp.dtype(operand_dtype).itemsize

    # ---- tile sizing from per-core VMEM (v5e/v6e 128 MiB, v7x 64 MiB) ----
    vmem_cap = _vmem_capacity_bytes()
    usable = int(vmem_cap * 0.75)                       # ~25% headroom
    single_buffer_t = C * sp_cols * op_bytes > (4 << 20)
    t_buffers = 1 if single_buffer_t else 2
    fixed = t_buffers * C * sp_cols * op_bytes + 2 * 8 * sp_cols * 4
    per_row = 7 * sp_cols * 4 + 2 * C * op_bytes        # ~7 live f32 [TI,Sp] temps
    ti_cap = max(8, (usable - fixed) // per_row)
    ti_cap = min(ti_cap, 1024)
    if ti_cap >= 256:
        ti_cap = (ti_cap // 256) * 256                  # full MXU passes
    elif ti_cap >= 128:
        ti_cap = 128
    else:
        ti_cap = max(8, (ti_cap // 8) * 8)
    TI = min(ti_cap, _round_up(S, 8))

    total_tiles = pl.cdiv(S, TI)
    n_split = 2 if total_tiles >= 2 else 1              # megacore row split
    n_ti = pl.cdiv(total_tiles, n_split)
    s_rows = n_split * n_ti * TI
    mask_rows = s_rows != S
    mask_cols = sp_cols != S

    # pad AFTER normalization (zero pads stay zero), cast for the MXU
    I_in = jnp.pad(I_sc, ((0, 0), (0, s_rows - S), (0, 0))).astype(operand_dtype)
    T_in = jnp.pad(T_cs, ((0, 0), (0, 0), (0, sp_cols - S))).astype(operand_dtype)

    est = fixed + per_row * TI + (1 << 20)
    vmem_limit = int(min(vmem_cap * 0.85, max(32 << 20, int(est * 1.25))))

    kernel = functools.partial(
        _cx_kernel, b=float(b), h=float(h), s_valid=S, tile_rows=TI,
        last_row_start=s_rows - TI, mask_rows=mask_rows, mask_cols=mask_cols)

    t_block = (1, C, sp_cols)
    t_index = lambda n, c, t: (n, 0, 0)
    t_spec = pl.BlockSpec(t_block, t_index)
    if single_buffer_t and hasattr(pl, "Buffered"):
        # resident T block only changes at batch boundaries -> single buffer it
        try:
            t_spec = pl.BlockSpec(t_block, t_index, pipeline_mode=pl.Buffered(1))
        except TypeError:
            t_spec = pl.BlockSpec(t_block, t_index)

    slab = pl.pallas_call(
        kernel,
        out_shape=jax.ShapeDtypeStruct((N, n_split, 8, sp_cols), jnp.float32),
        grid_spec=pltpu.PrefetchScalarGridSpec(
            num_scalar_prefetch=0,
            grid=(N, n_split, n_ti),
            in_specs=[
                pl.BlockSpec((1, TI, C), lambda n, c, t: (n, c * n_ti + t, 0)),
                t_spec,
            ],
            out_specs=pl.BlockSpec((1, 1, 8, sp_cols),
                                   lambda n, c, t: (n, c, 0, 0)),
        ),
        compiler_params=pltpu.CompilerParams(
            dimension_semantics=("parallel", "parallel", "arbitrary"),
            vmem_limit_bytes=vmem_limit,
        ),
    )(I_in, T_in)

    # finalize (tiny, fused by XLA): max over splits & sublane groups,
    # drop padded T columns, mean over T positions, -log, batch mean.
    cmax = jnp.max(slab, axis=(1, 2))[:, :S]             # [N, S]
    cs_mean = jnp.mean(cmax, axis=-1)                     # [N]
    return jnp.mean(-jnp.log(cs_mean))


# ---------------------------------------------------------------------------
# Feature extractor stand-in.
# TODO(synk): VGG_Model (pretrained VGG19 listener) is external to the reference
# snippet; replaced with a deterministic 2-layer conv+ReLU stand-in exposing the
# same {layer_name: feature_map} dict API.
# ---------------------------------------------------------------------------
def _make_conv_params(key, c_in, c_out):
    k1, k2 = jax.random.split(key)
    w = jax.random.normal(k1, (c_out, c_in, 3, 3), jnp.float32) * 0.1
    bias = jax.random.normal(k2, (c_out,), jnp.float32) * 0.01
    return w, bias


def _conv_relu(x, w, bias, stride=1):
    # x: NCHW, w: OIHW
    y = lax.conv_general_dilated(
        x, w, (stride, stride), "SAME",
        dimension_numbers=("NCHW", "OIHW", "NCHW"),
    )
    y = y + bias[None, :, None, None]
    return jnp.maximum(y, 0.0)


def feature_extractor(x, params):
    feats = {}
    hcur = _conv_relu(x, *params["relu1"], stride=1)
    feats["relu1"] = hcur
    hcur = _conv_relu(hcur, *params["relu2"], stride=2)
    feats["relu2"] = hcur
    return feats


def contextual_loss(images, gt, params, layers_weights, b=1.0, h=0.1,
                    max_1d_size=100):
    """Forward pass of Contextual_Loss (crop_quarter=False, cosine distance)."""
    vgg_images = feature_extractor(images, params)
    vgg_gt = feature_extractor(gt, params)

    loss = jnp.zeros((1,), jnp.float32)
    for key, w in layers_weights.items():
        fi, fg = vgg_images[key], vgg_gt[key]
        _, _, H, W = fi.shape
        # TODO(synk): _random_pooling (torch.randperm-based stochastic gather)
        # only triggers when H*W > max_1d_size**2; not hit at these sizes.
        assert H * W <= max_1d_size ** 2
        loss_t = cx_loss_layer(fi, fg, b=b, h=h)
        loss = loss + loss_t * w
    return loss


if __name__ == "__main__":
    key = jax.random.PRNGKey(0)
    k_img, k_gt, k_w1, k_w2 = jax.random.split(key, 4)

    # small shapes consistent with the module's NCHW conv inputs
    images = jax.random.uniform(k_img, (2, 4, 16, 16), jnp.float32)
    gt = jax.random.uniform(k_gt, (2, 4, 16, 16), jnp.float32)

    params = {
        "relu1": _make_conv_params(k_w1, 4, 8),    # -> [2, 8, 16, 16]  (S=256)
        "relu2": _make_conv_params(k_w2, 8, 16),   # -> [2, 16, 8, 8]   (S=64 -> 128 lanes)
    }
    layers_weights = {"relu1": 1.0, "relu2": 0.5}

    loss_fn = jax.jit(functools.partial(contextual_loss, b=1.0, h=0.1))
    loss = loss_fn(images, gt, params, layers_weights)
    loss = jax.block_until_ready(loss)
    assert loss.shape == (1,)
    assert bool(jnp.isfinite(loss[0]))
    print("KERNEL_OK")
</pallas_src>

<mosaic_0001>
module attributes {stable_mosaic.version = 11 : i64} {
  func.func @_cx_kernel(%arg0: i32, %arg1: i32, %arg2: i32, %arg3: memref<1x256x8xbf16, #tpu.memory_space<vmem>>, %arg4: memref<1x8x256xbf16, #tpu.memory_space<vmem>>, %arg5: memref<1x1x8x256xf32, #tpu.memory_space<vmem>>) attributes {dimension_semantics = [#tpu.dimension_semantics<parallel>, #tpu.dimension_semantics<parallel>, #tpu.dimension_semantics<arbitrary>], iteration_bounds = array<i64: 2, 1, 1>, scalar_prefetch = 0 : i64, scratch_operands = 0 : i64, tpu.core_type = #tpu.core_type<tc>, window_params = [{transform_indices = @transform_0, window_bounds = array<i64: 1, 256, 8>}, {transform_indices = @transform_1, window_bounds = array<i64: 1, 8, 256>}, {transform_indices = @transform_2, window_bounds = array<i64: 1, 1, 8, 256>}]} {
    %c0_i32 = arith.constant 0 : i32
    %0 = arith.cmpi eq, %arg2, %c0_i32 : i32
    %1 = arith.extui %0 : i1 to i32
    %c0_i32_0 = arith.constant 0 : i32
    %2 = arith.cmpi ne, %1, %c0_i32_0 : i32
    scf.if %2 {
      %cst_25 = arith.constant 0xFF800000 : f32
      %104 = vector.broadcast %cst_25 : f32 to vector<1x1x8x256xf32>
      %c0_26 = arith.constant 0 : index
      %c0_27 = arith.constant 0 : index
      %c0_28 = arith.constant 0 : index
      %c0_29 = arith.constant 0 : index
      %105 = vector.load %arg5[%c0_26, %c0_27, %c0_28, %c0_29] : memref<1x1x8x256xf32, #tpu.memory_space<vmem>>, vector<1x1x8x256xf32>
      tpu.vector_store %arg5[%c0_26, %c0_27, %c0_28, %c0_29], %104 {strides = array<i32>} : memref<1x1x8x256xf32, #tpu.memory_space<vmem>>, vector<1x1x8x256xf32>,
    } else {
    }
    %c0 = arith.constant 0 : index
    %c0_1 = arith.constant 0 : index
    %c0_2 = arith.constant 0 : index
    %3 = vector.load %arg3[%c0, %c0_1, %c0_2] : memref<1x256x8xbf16, #tpu.memory_space<vmem>>, vector<1x256x8xbf16>
    %4 = vector.shape_cast %3 : vector<1x256x8xbf16> to vector<256x8xbf16>
    %c0_3 = arith.constant 0 : index
    %c0_4 = arith.constant 0 : index
    %c0_5 = arith.constant 0 : index
    %5 = vector.load %arg4[%c0_3, %c0_4, %c0_5] : memref<1x8x256xbf16, #tpu.memory_space<vmem>>, vector<1x8x256xbf16>
    %6 = vector.shape_cast %5 : vector<1x8x256xbf16> to vector<8x256xbf16>
    %cst = arith.constant dense<0.000000e+00> : vector<256x256xf32>
    %7 = tpu.matmul %4, %6, %cst {dimension_numbers = #tpu.dot_dimension_numbers<[1], [0], [0], [1], [0, 0, 1, 1], [], []>} : vector<256x8xbf16>, vector<8x256xbf16>, vector<256x256xf32> -> vector<256x256xf32>
    %cst_6 = arith.constant dense<0xFF800000> : vector<256xf32>
    %8 = vector.multi_reduction <maximumf>, %7, %cst_6 [1] : vector<256x256xf32> to vector<256xf32>
    %9 = vector.shape_cast %8 : vector<256xf32> to vector<256x1xf32>
    %cst_7 = arith.constant 1.000000e+00 : f32
    %10 = vector.broadcast %cst_7 : f32 to vector<256x1xf32>
    %11 = arith.subf %10, %9 : vector<256x1xf32>
    %cst_8 = arith.constant 0.000000e+00 : f32
    %12 = vector.broadcast %cst_8 : f32 to vector<256x1xf32>
    %13 = arith.maximumf %11, %12 : vector<256x1xf32>
    %cst_9 = arith.constant 5.000000e-01 : f32
    %14 = vector.broadcast %cst_9 : f32 to vector<256x1xf32>
    %15 = arith.mulf %14, %13 : vector<256x1xf32>
    %cst_10 = arith.constant 9.99999974E-6 : f32
    %16 = vector.broadcast %cst_10 : f32 to vector<256x1xf32>
    %17 = arith.addf %15, %16 : vector<256x1xf32>
    %cst_11 = arith.constant 1.000000e-01 : f32
    %18 = vector.broadcast %cst_11 : f32 to vector<256x1xf32>
    %19 = arith.mulf %18, %17 : vector<256x1xf32>
    %20 = tpu.reciprocal %19 : vector<256x1xf32> -> vector<256x1xf32>
    %cst_12 = arith.constant 5.000000e-01 : f32
    %21 = vector.broadcast %cst_12 : f32 to vector<256x1xf32>
    %22 = arith.mulf %21, %20 : vector<256x1xf32>
    %cst_13 = arith.constant 1.000000e+00 : f32
    %23 = vector.broadcast %cst_13 : f32 to vector<256x256xf32>
    %24 = arith.subf %23, %7 : vector<256x256xf32>
    %cst_14 = arith.constant 0.000000e+00 : f32
    %25 = vector.broadcast %cst_14 : f32 to vector<256x256xf32>
    %26 = arith.maximumf %24, %25 : vector<256x256xf32>
    %27 = vector.broadcast %22 : vector<256x1xf32> to vector<256x256xf32>
    %28 = arith.mulf %26, %27 : vector<256x256xf32>
    %cst_15 = arith.constant 1.000000e+01 : f32
    %29 = vector.broadcast %cst_15 : f32 to vector<256x256xf32>
    %30 = arith.subf %29, %28 : vector<256x256xf32>
    %31 = math.exp %30 : vector<256x256xf32>
    %cst_16 = arith.constant dense<0.000000e+00> : vector<256xf32>
    %32 = vector.multi_reduction <add>, %31, %cst_16 [1] : vector<256x256xf32> to vector<256xf32>
    %33 = vector.shape_cast %32 : vector<256xf32> to vector<256x1xf32>
    %34 = tpu.reciprocal %33 : vector<256x1xf32> -> vector<256x1xf32>
    %35 = vector.broadcast %34 : vector<256x1xf32> to vector<256x256xf32>
    %36 = arith.mulf %31, %35 : vector<256x256xf32>
    %37 = vector.extract_strided_slice %36 {offsets = [0, 0], sizes = [8, 256], strides = [1, 1]} : vector<256x256xf32> to vector<8x256xf32>
    %38 = vector.extract_strided_slice %36 {offsets = [8, 0], sizes = [8, 256], strides = [1, 1]} : vector<256x256xf32> to vector<8x256xf32>
    %39 = arith.maximumf %37, %38 : vector<8x256xf32>
    %40 = vector.extract_strided_slice %36 {offsets = [16, 0], sizes = [8, 256], strides = [1, 1]} : vector<256x256xf32> to vector<8x256xf32>
    %41 = arith.maximumf %39, %40 : vector<8x256xf32>
    %42 = vector.extract_strided_slice %36 {offsets = [24, 0], sizes = [8, 256], strides = [1, 1]} : vector<256x256xf32> to vector<8x256xf32>
    %43 = arith.maximumf %41, %42 : vector<8x256xf32>
    %44 = vector.extract_strided_slice %36 {offsets = [32, 0], sizes = [8, 256], strides = [1, 1]} : vector<256x256xf32> to vector<8x256xf32>
    %45 = arith.maximumf %43, %44 : vector<8x256xf32>
    %46 = vector.extract_strided_slice %36 {offsets = [40, 0], sizes = [8, 256], strides = [1, 1]} : vector<256x256xf32> to vector<8x256xf32>
    %47 = arith.maximumf %45, %46 : vector<8x256xf32>
    %48 = vector.extract_strided_slice %36 {offsets = [48, 0], sizes = [8, 256], strides = [1, 1]} : vector<256x256xf32> to vector<8x256xf32>
    %49 = arith.maximumf %47, %48 : vector<8x256xf32>
    %50 = vector.extract_strided_slice %36 {offsets = [56, 0], sizes = [8, 256], strides = [1, 1]} : vector<256x256xf32> to vector<8x256xf32>
    %51 = arith.maximumf %49, %50 : vector<8x256xf32>
    %52 = vector.extract_strided_slice %36 {offsets = [64, 0], sizes = [8, 256], strides = [1, 1]} : vector<256x256xf32> to vector<8x256xf32>
    %53 = arith.maximumf %51, %52 : vector<8x256xf32>
    %54 = vector.extract_strided_slice %36 {offsets = [72, 0], sizes = [8, 256], strides = [1, 1]} : vector<256x256xf32> to vector<8x256xf32>
    %55 = arith.maximumf %53, %54 : vector<8x256xf32>
    %56 = vector.extract_strided_slice %36 {offsets = [80, 0], sizes = [8, 256], strides = [1, 1]} : vector<256x256xf32> to vector<8x256xf32>
    %57 = arith.maximumf %55, %56 : vector<8x256xf32>
    %58 = vector.extract_strided_slice %36 {offsets = [88, 0], sizes = [8, 256], strides = [1, 1]} : vector<256x256xf32> to vector<8x256xf32>
    %59 = arith.maximumf %57, %58 : vector<8x256xf32>
    %60 = vector.extract_strided_slice %36 {offsets = [96, 0], sizes = [8, 256], strides = [1, 1]} : vector<256x256xf32> to vector<8x256xf32>
    %61 = arith.maximumf %59, %60 : vector<8x256xf32>
    %62 = vector.extract_strided_slice %36 {offsets = [104, 0], sizes = [8, 256], strides = [1, 1]} : vector<256x256xf32> to vector<8x256xf32>
    %63 = arith.maximumf %61, %62 : vector<8x256xf32>
    %64 = vector.extract_strided_slice %36 {offsets = [112, 0], sizes = [8, 256], strides = [1, 1]} : vector<256x256xf32> to vector<8x256xf32>
    %65 = arith.maximumf %63, %64 : vector<8x256xf32>
    %66 = vector.extract_strided_slice %36 {offsets = [120, 0], sizes = [8, 256], strides = [1, 1]} : vector<256x256xf32> to vector<8x256xf32>
    %67 = arith.maximumf %65, %66 : vector<8x256xf32>
    %68 = vector.extract_strided_slice %36 {offsets = [128, 0], sizes = [8, 256], strides = [1, 1]} : vector<256x256xf32> to vector<8x256xf32>
    %69 = arith.maximumf %67, %68 : vector<8x256xf32>
    %70 = vector.extract_strided_slice %36 {offsets = [136, 0], sizes = [8, 256], strides = [1, 1]} : vector<256x256xf32> to vector<8x256xf32>
    %71 = arith.maximumf %69, %70 : vector<8x256xf32>
    %72 = vector.extract_strided_slice %36 {offsets = [144, 0], sizes = [8, 256], strides = [1, 1]} : vector<256x256xf32> to vector<8x256xf32>
    %73 = arith.maximumf %71, %72 : vector<8x256xf32>
    %74 = vector.extract_strided_slice %36 {offsets = [152, 0], sizes = [8, 256], strides = [1, 1]} : vector<256x256xf32> to vector<8x256xf32>
    %75 = arith.maximumf %73, %74 : vector<8x256xf32>
    %76 = vector.extract_strided_slice %36 {offsets = [160, 0], sizes = [8, 256], strides = [1, 1]} : vector<256x256xf32> to vector<8x256xf32>
    %77 = arith.maximumf %75, %76 : vector<8x256xf32>
    %78 = vector.extract_strided_slice %36 {offsets = [168, 0], sizes = [8, 256], strides = [1, 1]} : vector<256x256xf32> to vector<8x256xf32>
    %79 = arith.maximumf %77, %78 : vector<8x256xf32>
    %80 = vector.extract_strided_slice %36 {offsets = [176, 0], sizes = [8, 256], strides = [1, 1]} : vector<256x256xf32> to vector<8x256xf32>
    %81 = arith.maximumf %79, %80 : vector<8x256xf32>
    %82 = vector.extract_strided_slice %36 {offsets = [184, 0], sizes = [8, 256], strides = [1, 1]} : vector<256x256xf32> to vector<8x256xf32>
    %83 = arith.maximumf %81, %82 : vector<8x256xf32>
    %84 = vector.extract_strided_slice %36 {offsets = [192, 0], sizes = [8, 256], strides = [1, 1]} : vector<256x256xf32> to vector<8x256xf32>
    %85 = arith.maximumf %83, %84 : vector<8x256xf32>
    %86 = vector.extract_strided_slice %36 {offsets = [200, 0], sizes = [8, 256], strides = [1, 1]} : vector<256x256xf32> to vector<8x256xf32>
    %87 = arith.maximumf %85, %86 : vector<8x256xf32>
    %88 = vector.extract_strided_slice %36 {offsets = [208, 0], sizes = [8, 256], strides = [1, 1]} : vector<256x256xf32> to vector<8x256xf32>
    %89 = arith.maximumf %87, %88 : vector<8x256xf32>
    %90 = vector.extract_strided_slice %36 {offsets = [216, 0], sizes = [8, 256], strides = [1, 1]} : vector<256x256xf32> to vector<8x256xf32>
    %91 = arith.maximumf %89, %90 : vector<8x256xf32>
    %92 = vector.extract_strided_slice %36 {offsets = [224, 0], sizes = [8, 256], strides = [1, 1]} : vector<256x256xf32> to vector<8x256xf32>
    %93 = arith.maximumf %91, %92 : vector<8x256xf32>
    %94 = vector.extract_strided_slice %36 {offsets = [232, 0], sizes = [8, 256], strides = [1, 1]} : vector<256x256xf32> to vector<8x256xf32>
    %95 = arith.maximumf %93, %94 : vector<8x256xf32>
    %96 = vector.extract_strided_slice %36 {offsets = [240, 0], sizes = [8, 256], strides = [1, 1]} : vector<256x256xf32> to vector<8x256xf32>
    %97 = arith.maximumf %95, %96 : vector<8x256xf32>
    %98 = vector.extract_strided_slice %36 {offsets = [248, 0], sizes = [8, 256], strides = [1, 1]} : vector<256x256xf32> to vector<8x256xf32>
    %99 = arith.maximumf %97, %98 : vector<8x256xf32>
    %c0_17 = arith.constant 0 : index
    %c0_18 = arith.constant 0 : index
    %c0_19 = arith.constant 0 : index
    %c0_20 = arith.constant 0 : index
    %100 = vector.load %arg5[%c0_17, %c0_18, %c0_19, %c0_20] : memref<1x1x8x256xf32, #tpu.memory_space<vmem>>, vector<1x1x8x256xf32>
    %101 = vector.shape_cast %99 : vector<8x256xf32> to vector<1x1x8x256xf32>
    %102 = arith.maximumf %100, %101 : vector<1x1x8x256xf32>
    %c0_21 = arith.constant 0 : index
    %c0_22 = arith.constant 0 : index
    %c0_23 = arith.constant 0 : index
    %c0_24 = arith.constant 0 : index
    %103 = vector.load %arg5[%c0_21, %c0_22, %c0_23, %c0_24] : memref<1x1x8x256xf32, #tpu.memory_space<vmem>>, vector<1x1x8x256xf32>
    tpu.vector_store %arg5[%c0_21, %c0_22, %c0_23, %c0_24], %102 {strides = array<i32>} : memref<1x1x8x256xf32, #tpu.memory_space<vmem>>, vector<1x1x8x256xf32>,
    return
  }
  func.func @transform_0(%arg0: i32, %arg1: i32, %arg2: i32) -> (i32, i32, i32) {
    %c1_i32 = arith.constant 1 : i32
    %0 = arith.muli %arg1, %c1_i32 : i32
    %1 = arith.addi %0, %arg2 : i32
    %c0_i32 = arith.constant 0 : i32
    %c0_i32_0 = arith.constant 0 : i32
    return %arg0, %1, %c0_i32 : i32, i32, i32
  }
  func.func @transform_1(%arg0: i32, %arg1: i32, %arg2: i32) -> (i32, i32, i32) {
    %c0_i32 = arith.constant 0 : i32
    %c0_i32_0 = arith.constant 0 : i32
    %c0_i32_1 = arith.constant 0 : i32
    return %arg0, %c0_i32, %c0_i32_0 : i32, i32, i32
  }
  func.func @transform_2(%arg0: i32, %arg1: i32, %arg2: i32) -> (i32, i32, i32, i32) {
    %c0_i32 = arith.constant 0 : i32
    %c0_i32_0 = arith.constant 0 : i32
    %c0_i32_1 = arith.constant 0 : i32
    return %arg0, %arg1, %c0_i32, %c0_i32_0 : i32, i32, i32, i32
  }
}

module attributes {stable_mosaic.version = 11 : i64} {
  func.func @_cx_kernel(%arg0: i32, %arg1: i32, %arg2: i32, %arg3: memref<1x64x16xbf16, #tpu.memory_space<vmem>>, %arg4: memref<1x16x128xbf16, #tpu.memory_space<vmem>>, %arg5: memref<1x1x8x128xf32, #tpu.memory_space<vmem>>) attributes {dimension_semantics = [#tpu.dimension_semantics<parallel>, #tpu.dimension_semantics<parallel>, #tpu.dimension_semantics<arbitrary>], iteration_bounds = array<i64: 2, 1, 1>, scalar_prefetch = 0 : i64, scratch_operands = 0 : i64, tpu.core_type = #tpu.core_type<tc>, window_params = [{transform_indices = @transform_0, window_bounds = array<i64: 1, 64, 16>}, {transform_indices = @transform_1, window_bounds = array<i64: 1, 16, 128>}, {transform_indices = @transform_2, window_bounds = array<i64: 1, 1, 8, 128>}]} {
    %c0_i32 = arith.constant 0 : i32
    %0 = arith.cmpi eq, %arg2, %c0_i32 : i32
    %1 = arith.extui %0 : i1 to i32
    %c0_i32_0 = arith.constant 0 : i32
    %2 = arith.cmpi ne, %1, %c0_i32_0 : i32
    scf.if %2 {
      %cst_27 = arith.constant 0xFF800000 : f32
      %67 = vector.broadcast %cst_27 : f32 to vector<1x1x8x128xf32>
      %c0_28 = arith.constant 0 : index
      %c0_29 = arith.constant 0 : index
      %c0_30 = arith.constant 0 : index
      %c0_31 = arith.constant 0 : index
      %68 = vector.load %arg5[%c0_28, %c0_29, %c0_30, %c0_31] : memref<1x1x8x128xf32, #tpu.memory_space<vmem>>, vector<1x1x8x128xf32>
      tpu.vector_store %arg5[%c0_28, %c0_29, %c0_30, %c0_31], %67 {strides = array<i32>} : memref<1x1x8x128xf32, #tpu.memory_space<vmem>>, vector<1x1x8x128xf32>,
    } else {
    }
    %c0 = arith.constant 0 : index
    %c0_1 = arith.constant 0 : index
    %c0_2 = arith.constant 0 : index
    %3 = vector.load %arg3[%c0, %c0_1, %c0_2] : memref<1x64x16xbf16, #tpu.memory_space<vmem>>, vector<1x64x16xbf16>
    %4 = vector.shape_cast %3 : vector<1x64x16xbf16> to vector<64x16xbf16>
    %c0_3 = arith.constant 0 : index
    %c0_4 = arith.constant 0 : index
    %c0_5 = arith.constant 0 : index
    %5 = vector.load %arg4[%c0_3, %c0_4, %c0_5] : memref<1x16x128xbf16, #tpu.memory_space<vmem>>, vector<1x16x128xbf16>
    %6 = vector.shape_cast %5 : vector<1x16x128xbf16> to vector<16x128xbf16>
    %cst = arith.constant dense<0.000000e+00> : vector<64x128xf32>
    %7 = tpu.matmul %4, %6, %cst {dimension_numbers = #tpu.dot_dimension_numbers<[1], [0], [0], [1], [0, 0, 1, 1], [], []>} : vector<64x16xbf16>, vector<16x128xbf16>, vector<64x128xf32> -> vector<64x128xf32>
    %8 = tpu.iota {dimensions = array<i32: 1>} : vector<1x128xi32>
    %c64_i32 = arith.constant 64 : i32
    %9 = vector.broadcast %c64_i32 : i32 to vector<1x128xi32>
    %10 = arith.cmpi slt, %8, %9 : vector<1x128xi32>
    %cst_6 = arith.constant 0xFF800000 : f32
    %11 = vector.shape_cast %10 : vector<1x128xi1> to vector<1x128xi1>
    %12 = vector.broadcast %11 : vector<1x128xi1> to vector<64x128xi1>
    %13 = vector.broadcast %cst_6 : f32 to vector<64x128xf32>
    %14 = arith.select %12, %7, %13 : vector<64x128xi1>, vector<64x128xf32>
    %cst_7 = arith.constant dense<0xFF800000> : vector<64xf32>
    %15 = vector.multi_reduction <maximumf>, %14, %cst_7 [1] : vector<64x128xf32> to vector<64xf32>
    %16 = vector.shape_cast %15 : vector<64xf32> to vector<64x1xf32>
    %cst_8 = arith.constant 1.000000e+00 : f32
    %17 = vector.broadcast %cst_8 : f32 to vector<64x1xf32>
    %18 = arith.subf %17, %16 : vector<64x1xf32>
    %cst_9 = arith.constant 0.000000e+00 : f32
    %19 = vector.broadcast %cst_9 : f32 to vector<64x1xf32>
    %20 = arith.maximumf %18, %19 : vector<64x1xf32>
    %cst_10 = arith.constant 5.000000e-01 : f32
    %21 = vector.broadcast %cst_10 : f32 to vector<64x1xf32>
    %22 = arith.mulf %21, %20 : vector<64x1xf32>
    %cst_11 = arith.constant 9.99999974E-6 : f32
    %23 = vector.broadcast %cst_11 : f32 to vector<64x1xf32>
    %24 = arith.addf %22, %23 : vector<64x1xf32>
    %cst_12 = arith.constant 1.000000e-01 : f32
    %25 = vector.broadcast %cst_12 : f32 to vector<64x1xf32>
    %26 = arith.mulf %25, %24 : vector<64x1xf32>
    %27 = tpu.reciprocal %26 : vector<64x1xf32> -> vector<64x1xf32>
    %cst_13 = arith.constant 5.000000e-01 : f32
    %28 = vector.broadcast %cst_13 : f32 to vector<64x1xf32>
    %29 = arith.mulf %28, %27 : vector<64x1xf32>
    %cst_14 = arith.constant 1.000000e+00 : f32
    %30 = vector.broadcast %cst_14 : f32 to vector<64x128xf32>
    %31 = arith.subf %30, %7 : vector<64x128xf32>
    %cst_15 = arith.constant 0.000000e+00 : f32
    %32 = vector.broadcast %cst_15 : f32 to vector<64x128xf32>
    %33 = arith.maximumf %31, %32 : vector<64x128xf32>
    %34 = vector.broadcast %29 : vector<64x1xf32> to vector<64x128xf32>
    %35 = arith.mulf %33, %34 : vector<64x128xf32>
    %cst_16 = arith.constant 1.000000e+01 : f32
    %36 = vector.broadcast %cst_16 : f32 to vector<64x128xf32>
    %37 = arith.subf %36, %35 : vector<64x128xf32>
    %38 = math.exp %37 : vector<64x128xf32>
    %cst_17 = arith.constant 0.000000e+00 : f32
    %39 = vector.shape_cast %10 : vector<1x128xi1> to vector<1x128xi1>
    %40 = vector.broadcast %39 : vector<1x128xi1> to vector<64x128xi1>
    %41 = vector.broadcast %cst_17 : f32 to vector<64x128xf32>
    %42 = arith.select %40, %38, %41 : vector<64x128xi1>, vector<64x128xf32>
    %cst_18 = arith.constant dense<0.000000e+00> : vector<64xf32>
    %43 = vector.multi_reduction <add>, %42, %cst_18 [1] : vector<64x128xf32> to vector<64xf32>
    %44 = vector.shape_cast %43 : vector<64xf32> to vector<64x1xf32>
    %45 = tpu.reciprocal %44 : vector<64x1xf32> -> vector<64x1xf32>
    %46 = vector.broadcast %45 : vector<64x1xf32> to vector<64x128xf32>
    %47 = arith.mulf %38, %46 : vector<64x128xf32>
    %48 = vector.extract_strided_slice %47 {offsets = [0, 0], sizes = [8, 128], strides = [1, 1]} : vector<64x128xf32> to vector<8x128xf32>
    %49 = vector.extract_strided_slice %47 {offsets = [8, 0], sizes = [8, 128], strides = [1, 1]} : vector<64x128xf32> to vector<8x128xf32>
    %50 = arith.maximumf %48, %49 : vector<8x128xf32>
    %51 = vector.extract_strided_slice %47 {offsets = [16, 0], sizes = [8, 128], strides = [1, 1]} : vector<64x128xf32> to vector<8x128xf32>
    %52 = arith.maximumf %50, %51 : vector<8x128xf32>
    %53 = vector.extract_strided_slice %47 {offsets = [24, 0], sizes = [8, 128], strides = [1, 1]} : vector<64x128xf32> to vector<8x128xf32>
    %54 = arith.maximumf %52, %53 : vector<8x128xf32>
    %55 = vector.extract_strided_slice %47 {offsets = [32, 0], sizes = [8, 128], strides = [1, 1]} : vector<64x128xf32> to vector<8x128xf32>
    %56 = arith.maximumf %54, %55 : vector<8x128xf32>
    %57 = vector.extract_strided_slice %47 {offsets = [40, 0], sizes = [8, 128], strides = [1, 1]} : vector<64x128xf32> to vector<8x128xf32>
    %58 = arith.maximumf %56, %57 : vector<8x128xf32>
    %59 = vector.extract_strided_slice %47 {offsets = [48, 0], sizes = [8, 128], strides = [1, 1]} : vector<64x128xf32> to vector<8x128xf32>
    %60 = arith.maximumf %58, %59 : vector<8x128xf32>
    %61 = vector.extract_strided_slice %47 {offsets = [56, 0], sizes = [8, 128], strides = [1, 1]} : vector<64x128xf32> to vector<8x128xf32>
    %62 = arith.maximumf %60, %61 : vector<8x128xf32>
    %c0_19 = arith.constant 0 : index
    %c0_20 = arith.constant 0 : index
    %c0_21 = arith.constant 0 : index
    %c0_22 = arith.constant 0 : index
    %63 = vector.load %arg5[%c0_19, %c0_20, %c0_21, %c0_22] : memref<1x1x8x128xf32, #tpu.memory_space<vmem>>, vector<1x1x8x128xf32>
    %64 = vector.shape_cast %62 : vector<8x128xf32> to vector<1x1x8x128xf32>
    %65 = arith.maximumf %63, %64 : vector<1x1x8x128xf32>
    %c0_23 = arith.constant 0 : index
    %c0_24 = arith.constant 0 : index
    %c0_25 = arith.constant 0 : index
    %c0_26 = arith.constant 0 : index
    %66 = vector.load %arg5[%c0_23, %c0_24, %c0_25, %c0_26] : memref<1x1x8x128xf32, #tpu.memory_space<vmem>>, vector<1x1x8x128xf32>
    tpu.vector_store %arg5[%c0_23, %c0_24, %c0_25, %c0_26], %65 {strides = array<i32>} : memref<1x1x8x128xf32, #tpu.memory_space<vmem>>, vector<1x1x8x128xf32>,
    return
  }
  func.func @transform_0(%arg0: i32, %arg1: i32, %arg2: i32) -> (i32, i32, i32) {
    %c1_i32 = arith.constant 1 : i32
    %0 = arith.muli %arg1, %c1_i32 : i32
    %1 = arith.addi %0, %arg2 : i32
    %c0_i32 = arith.constant 0 : i32
    %c0_i32_0 = arith.constant 0 : i32
    return %arg0, %1, %c0_i32 : i32, i32, i32
  }
  func.func @transform_1(%arg0: i32, %arg1: i32, %arg2: i32) -> (i32, i32, i32) {
    %c0_i32 = arith.constant 0 : i32
    %c0_i32_0 = arith.constant 0 : i32
    %c0_i32_1 = arith.constant 0 : i32
    return %arg0, %c0_i32, %c0_i32_0 : i32, i32, i32
  }
  func.func @transform_2(%arg0: i32, %arg1: i32, %arg2: i32) -> (i32, i32, i32, i32) {
    %c0_i32 = arith.constant 0 : i32
    %c0_i32_0 = arith.constant 0 : i32
    %c0_i32_1 = arith.constant 0 : i32
    return %arg0, %arg1, %c0_i32, %c0_i32_0 : i32, i32, i32, i32
  }
}

</mosaic_0001>

<bundles_post_ra>
// kernel: contextual_loss.2
= control target key start
LH: loop header
LB: loop body
LE: loop exit
PB: predicated region body
PF: predicated region fallthrough
CT: control target
= control target key end

     0   :  { %s2051_s9 = smov 0   ;;  %s2053_s10 = smov 0   ;;  %s2869_s0 = inlined_call_operand.vmem [shape: bf16[2,256,8], index: 0, kind: input, shape index: {}]   ;;  %s2870_s1 = inlined_call_operand.vmem [shape: bf16[2,8,256], index: 1, kind: input, shape index: {}]   ;;  %s2871_s2 = inlined_call_operand.vmem [shape: f32[2,1,8,256], index: 2, kind: output, shape index: {}]  }
   0x1   :  { %s2055_s11 = smov 0  }
   0x2 LB: > { %s31_s12 = sadd.s32 1, %s2029_s10  ;;  %p1662_p0 = scmp.ge.s32.totalorder %s2033_s11, 1  ;;  %s2033_s11 = sphi %s2055_s11, %s12_s11   ;;  %s2029_s10 = sphi %s2053_s10, %s3020_s10   ;;  %s2025_s9 = sphi %s2051_s9, %s3019_s9  }
   0x3   : > { %p33_p1 = scmp.ge.s32.totalorder %s31_s12, 2  ;;  %p154_p2 = scmp.lt.s32.totalorder %s2033_s11, 3 }
   0x5   : > { %s3022_s12 = smov (%p33_p1, %s31_s12), 0  ;;  %p155_p3 = pnand %p1662_p0, %p154_p2 }
   0x7   : > { %158 = sbr.rel (%p155_p3) target bundleno = 702 (0x2be), region = 28 }
   0xe   : > { %p192_p4 = scmp.lt.s32.totalorder %s2025_s9, 1  ;;  %v2035_v0 = vmov 0   ;;  %vm390_vm0 = vcmask 1043456   ;;  %vm341_vm1 = vcmask 64512  }
   0xf   : > { %429 = vmatprep.mubr.bf16.mxu0 %v2035_v0  ;;  %509 = vmatprep.mubr.bf16.mxu1 %v2035_v0 }
  0x10   : > { %s3024_s9 = smov (!%p192_p4, %s2025_s9), 1 }
  0x11   : > { %s1706_s13 = sshll.u32 %s3024_s9, 7  ;;  %s1707_s14 = sshll.u32 %s3024_s9, 3 }
  0x12   : > { %s2076_s17 = scalar_lea.vmem %s2869_s0, %s1706_s13  ;;  %s206_s20 = scalar_lea.vmem %s2870_s1, %s1707_s14 }
  0x13   : > { %v255_v1 = vld [vmem:[%s206_s20] sm:$0xff]  ;;  %v1740_v7 = vld [vmem:[%s2076_s17 + $0x8] sm:$0xff]   ;;  %v1741_v9 = vld [vmem:[%s2076_s17 + $0x10] sm:$0xff]   ;;  %s1708_s21 = sshll.u32 %s3024_s9, 4 }
  0x14   : > { %v1686_v2 = vcombine.high %v255_v1, %v255_v1  ;;  %v1685_v3 = vcombine.low %v255_v1, %v255_v1  ;;  %v1739_v5 = vld [vmem:[%s2076_s17] sm:$0xff]   ;;  %v1745_v8 = vld [vmem:[%s2076_s17 + $0x48] sm:$0xff]   ;;  %v1747_v10 = vld [vmem:[%s2076_s17 + $0x50] sm:$0xff]   ;;  %s215_s24 = scalar_lea.vmem %s2871_s2, %s1708_s21 }
  0x15   : > { %v1743_v6 = vld [vmem:[%s2076_s17 + $0x40] sm:$0xff]   ;;  %v1742_v11 = vld [vmem:[%s2076_s17 + $0x18] sm:$0xff]   ;;  %v1746_v15 = vld [vmem:[%s2076_s17 + $0x28] sm:$0xff]  }
  0x16   : > { %1687 = vmatprep.subr.msk.bf16.mxu0 %vm390_vm0, %v1686_v2  ;;  %v392_v4 = vsel %vm390_vm0, %v1685_v3, 0  ;;  %1709 = vmatprep.subr.msk.bf16.mxu1 %vm390_vm0, %v1686_v2  ;;  %v1749_v12 = vld [vmem:[%s2076_s17 + $0x58] sm:$0xff]   ;;  %v1744_v13 = vld [vmem:[%s2076_s17 + $0x20] sm:$0xff]   ;;  %v1752_v16 = vld [vmem:[%s2076_s17 + $0x68] sm:$0xff]  }
  0x17   : > { %398 = vmatpush1.bf16.msra.mxu0 %v392_v4  ;;  %1710 = vmatpush1.bf16.msra.mxu1 %v392_v4  ;;  %v1751_v14 = vld [vmem:[%s2076_s17 + $0x60] sm:$0xff]   ;;  %v1748_v17 = vld [vmem:[%s2076_s17 + $0x30] sm:$0xff]   ;;  %v1750_v19 = vld [vmem:[%s2076_s17 + $0x38] sm:$0xff]  }
  0x18   : > { %v1753_v18 = vld [vmem:[%s2076_s17 + $0x70] sm:$0xff]   ;;  %v1754_v20 = vld [vmem:[%s2076_s17 + $0x78] sm:$0xff]  }
  0x1a   : > { %1688 = vmatmul.mubr.msk.bf16.vlgmr.msra.gmra.mrb[0].mxu0 %vm341_vm1, %v1739_v5  ;;  %1696 = vmatmul.mubr.msk.bf16.vlgmr.msra.gmra.mrb[0].mxu1 %vm341_vm1, %v1743_v6 }
  0x1b   : > { %439 = vmatprep.mubr.bf16.mxu0 %v2035_v0  ;;  %519 = vmatprep.mubr.bf16.mxu1 %v2035_v0 }
  0x22   : > { %1689 = vmatmul.mubr.msk.bf16.gmra.mrb[4].mxu0 %vm341_vm1, %v1740_v7  ;;  %1697 = vmatmul.mubr.msk.bf16.gmra.mrb[4].mxu1 %vm341_vm1, %v1745_v8 }
  0x23   : > { %449 = vmatprep.mubr.bf16.mxu0 %v2035_v0  ;;  %529 = vmatprep.mubr.bf16.mxu1 %v2035_v0 }
  0x2a   : > { %1690 = vmatmul.mubr.msk.bf16.gmra.mrb[8].mxu0 %vm341_vm1, %v1741_v9  ;;  %1698 = vmatmul.mubr.msk.bf16.gmra.mrb[8].mxu1 %vm341_vm1, %v1747_v10 }
  0x2b   : > { %459 = vmatprep.mubr.bf16.mxu0 %v2035_v0  ;;  %539 = vmatprep.mubr.bf16.mxu1 %v2035_v0 }
  0x32   : > { %1691 = vmatmul.mubr.msk.bf16.gmra.mrb[12].mxu0 %vm341_vm1, %v1742_v11  ;;  %1699 = vmatmul.mubr.msk.bf16.gmra.mrb[12].mxu1 %vm341_vm1, %v1749_v12 }
  0x33   : > { %469 = vmatprep.mubr.bf16.mxu0 %v2035_v0  ;;  %549 = vmatprep.mubr.bf16.mxu1 %v2035_v0 }
  0x3a   : > { %1692 = vmatmul.mubr.msk.bf16.gmra.mrb[16].mxu0 %vm341_vm1, %v1744_v13  ;;  %1700 = vmatmul.mubr.msk.bf16.gmra.mrb[16].mxu1 %vm341_vm1, %v1751_v14 }
  0x3b   : > { %479 = vmatprep.mubr.bf16.mxu0 %v2035_v0  ;;  %559 = vmatprep.mubr.bf16.mxu1 %v2035_v0 }
  0x42   : > { %1693 = vmatmul.mubr.msk.bf16.gmra.mrb[20].mxu0 %vm341_vm1, %v1746_v15  ;;  %1701 = vmatmul.mubr.msk.bf16.gmra.mrb[20].mxu1 %vm341_vm1, %v1752_v16 }
  0x43   : > { %489 = vmatprep.mubr.bf16.mxu0 %v2035_v0  ;;  %569 = vmatprep.mubr.bf16.mxu1 %v2035_v0 }
  0x4a   : > { %1694 = vmatmul.mubr.msk.bf16.gmra.mrb[24].mxu0 %vm341_vm1, %v1748_v17  ;;  %1702 = vmatmul.mubr.msk.bf16.gmra.mrb[24].mxu1 %vm341_vm1, %v1753_v18 }
  0x4b   : > { %499 = vmatprep.mubr.bf16.mxu0 %v2035_v0  ;;  %579 = vmatprep.mubr.bf16.mxu1 %v2035_v0 }
  0x52   : > { %1695 = vmatmul.mubr.msk.bf16.gmra.mrb[28].mxu0 %vm341_vm1, %v1750_v19  ;;  %1703 = vmatmul.mubr.msk.bf16.gmra.mrb[28].mxu1 %vm341_vm1, %v1754_v20 }
  0xed   : > { %v2113_v21 = vpop.f32.mrb[0].mxu0  ;;  %v2115_v22 = vpop.f32.mrb[0].mxu1 }
  0xee   : > { %v2117_v23 = vpop.f32.mrb[1].mxu0  ;;  %v2119_v24 = vpop.f32.mrb[1].mxu1 }
  0xef   : > { %v2121_v25 = vpop.f32.mrb[2].mxu0  ;;  %v590_v26 = vmax.f32 %v2113_v21, %v2117_v23  ;;  %v2125_v27 = vpop.f32.mrb[2].mxu1 }
  0xf0   : > { %v2129_v29 = vpop.f32.mrb[3].mxu0  ;;  %v2131_v30 = vpop.f32.mrb[3].mxu1 }
  0xf1   : > { %591 = vmax.xlane.f32.xlu0 %v590_v26  ;;  %v593_v31 = vmax.f32 %v2121_v25, %v2129_v29 }
  0xf5   : > { %594 = vmax.xlane.f32.xlu0 %v593_v31  ;;  %v2137_v33 = vpop.f32.mrb[4].mxu0  ;;  %v2139_v34 = vpop.f32.mrb[4].mxu1 }
  0xf6   : > { %v2141_v35 = vpop.f32.mrb[5].mxu0  ;;  %v2143_v36 = vpop.f32.mrb[5].mxu1 }
  0xf7   : > { %v2145_v37 = vpop.f32.mrb[6].mxu0  ;;  %v596_v38 = vmax.f32 %v2137_v33, %v2141_v35  ;;  %v2149_v39 = vpop.f32.mrb[6].mxu1 }
  0xf8   : > { %v2153_v41 = vpop.f32.mrb[7].mxu0  ;;  %v2155_v42 = vpop.f32.mrb[7].mxu1 }
  0xf9   : > { %597 = vmax.xlane.f32.xlu1 %v596_v38  ;;  %v599_v43 = vmax.f32 %v2145_v37, %v2153_v41 }
  0xfd   : > { %600 = vmax.xlane.f32.xlu1 %v599_v43  ;;  %v2161_v45 = vpop.f32.mrb[8].mxu0  ;;  %v2163_v46 = vpop.f32.mrb[8].mxu1 }
  0xfe   : > { %v2165_v47 = vpop.f32.mrb[9].mxu0  ;;  %v2167_v48 = vpop.f32.mrb[9].mxu1 }
  0xff   : > { %v2169_v49 = vpop.f32.mrb[10].mxu0  ;;  %v602_v50 = vmax.f32 %v2161_v45, %v2165_v47  ;;  %v2173_v51 = vpop.f32.mrb[10].mxu1 }
 0x100   : > { %v2177_v53 = vpop.f32.mrb[11].mxu0  ;;  %v2179_v54 = vpop.f32.mrb[11].mxu1 }
 0x101   : > { %603 = vmax.xlane.f32.xlu0 %v602_v50  ;;  %v605_v55 = vmax.f32 %v2169_v49, %v2177_v53 }
 0x103   : > { %606 = vmax.xlane.f32.xlu1 %v605_v55 }
 0x105   : > { %v2185_v57 = vpop.f32.mrb[12].mxu0  ;;  %v2187_v58 = vpop.f32.mrb[12].mxu1 }
 0x106   : > { %v2189_v59 = vpop.f32.mrb[13].mxu0  ;;  %v2191_v60 = vpop.f32.mrb[13].mxu1 }
 0x107   : > { %v2193_v61 = vpop.f32.mrb[14].mxu0  ;;  %v608_v62 = vmax.f32 %v2185_v57, %v2189_v59  ;;  %v2197_v63 = vpop.f32.mrb[14].mxu1 }
 0x108   : > { %v2201_v1 = vpop.f32.mrb[15].mxu0  ;;  %v2203_v2 = vpop.f32.mrb[15].mxu1 }
 0x109   : > { %609 = vmax.xlane.f32.xlu0 %v608_v62  ;;  %v611_v3 = vmax.f32 %v2193_v61, %v2201_v1 }
 0x10b   : > { %612 = vmax.xlane.f32.xlu1 %v611_v3 }
 0x10d   : > { %v2209_v5 = vpop.f32.mrb[16].mxu0  ;;  %v2211_v6 = vpop.f32.mrb[16].mxu1 }
 0x10e   : > { %v2213_v7 = vpop.f32.mrb[17].mxu0  ;;  %v2215_v8 = vpop.f32.mrb[17].mxu1 }
 0x10f   : > { %v2217_v9 = vpop.f32.mrb[18].mxu0  ;;  %v614_v10 = vmax.f32 %v2209_v5, %v2213_v7  ;;  %v2221_v11 = vpop.f32.mrb[18].mxu1  ;;  %v662_v12 = vmax.f32 %v2211_v6, %v2215_v8 }
 0x110   : > { %v2225_v13 = vpop.f32.mrb[19].mxu0  ;;  %v2227_v14 = vpop.f32.mrb[19].mxu1 }
 0x111   : > { %615 = vmax.xlane.f32.xlu0 %v614_v10  ;;  %v617_v15 = vmax.f32 %v2217_v9, %v2225_v13  ;;  %v665_v16 = vmax.f32 %v2221_v11, %v2227_v14 }
 0x113   : > { %618 = vmax.xlane.f32.xlu1 %v617_v15 }
 0x115   : > { %v2233_v17 = vpop.f32.mrb[20].mxu0  ;;  %v2235_v18 = vpop.f32.mrb[20].mxu1 }
 0x116   : > { %v2237_v19 = vpop.f32.mrb[21].mxu0  ;;  %v2239_v20 = vpop.f32.mrb[21].mxu1 }
 0x117   : > { %v2241_v26 = vpop.f32.mrb[22].mxu0  ;;  %v620_v31 = vmax.f32 %v2233_v17, %v2237_v19  ;;  %v2245_v38 = vpop.f32.mrb[22].mxu1  ;;  %v668_v43 = vmax.f32 %v2235_v18, %v2239_v20 }
 0x118   : > { %v2249_v50 = vpop.f32.mrb[23].mxu0  ;;  %v2251_v55 = vpop.f32.mrb[23].mxu1 }
 0x119   : > { %2907 = vst [vmem:[#allocation2_spill] sm:$0xff] %v2249_v50  ;;  %2908 = vst [vmem:[#allocation3_spill] sm:$0xff] %v2251_v55  ;;  %621 = vmax.xlane.f32.xlu0 %v620_v31  ;;  %v623_v62 = vmax.f32 %v2241_v26, %v2249_v50  ;;  %v671_v3 = vmax.f32 %v2245_v38, %v2251_v55 }
 0x11b   : > { %624 = vmax.xlane.f32.xlu1 %v623_v62 }
 0x11d   : > { %v2257_v10 = vpop.f32.mrb[24].mxu0  ;;  %v2259_v15 = vpop.f32.mrb[24].mxu1 }
 0x11e   : > { %2909 = vst [vmem:[#allocation4_spill] sm:$0xff] %v2257_v10  ;;  %2910 = vst [vmem:[#allocation5_spill] sm:$0xff] %v2259_v15  ;;  %v2261_v4 = vpop.f32.mrb[25].mxu0  ;;  %v2263_v0 = vpop.f32.mrb[25].mxu1 }
 0x11f   : > { %2911 = vst [vmem:[#allocation6_spill] sm:$0xff] %v2261_v4  ;;  %2912 = vst [vmem:[#allocation7_spill] sm:$0xff] %v2263_v0  ;;  %v2265_v56 = vpop.f32.mrb[26].mxu0  ;;  %v626_v31 = vmax.f32 %v2257_v10, %v2261_v4  ;;  %v2269_v52 = vpop.f32.mrb[26].mxu1  ;;  %v674_v44 = vmax.f32 %v2259_v15, %v2263_v0 }
 0x120   : > { %2913 = vst [vmem:[#allocation8_spill] sm:$0xff] %v2265_v56  ;;  %2914 = vst [vmem:[#allocation9_spill] sm:$0xff] %v2269_v52  ;;  %v2273_v40 = vpop.f32.mrb[27].mxu0  ;;  %v2275_v62 = vpop.f32.mrb[27].mxu1 }
 0x121   : > { %2915 = vst [vmem:[#allocation10_spill] sm:$0xff] %v2273_v40  ;;  %2916 = vst [vmem:[#allocation11_spill] sm:$0xff] %v2275_v62  ;;  %627 = vmax.xlane.f32.xlu0 %v626_v31  ;;  %v629_v32 = vmax.f32 %v2265_v56, %v2273_v40  ;;  %v677_v28 = vmax.f32 %v2269_v52, %v2275_v62 }
 0x123   : > { %630 = vmax.xlane.f32.xlu1 %v629_v32 }
 0x125   : > { %v2281_v55 = vpop.f32.mrb[28].mxu0  ;;  %v2283_v4 = vpop.f32.mrb[28].mxu1 }
 0x126   : > { %2917 = vst [vmem:[#allocation12_spill] sm:$0xff] %v2281_v55  ;;  %v2285_v10 = vpop.f32.mrb[29].mxu0  ;;  %v2287_v50 = vpop.f32.mrb[29].mxu1 }
 0x127   : > { %2918 = vst [vmem:[#allocation13_spill] sm:$0xff] %v2285_v10  ;;  %2919 = vst [vmem:[#allocation14_spill] sm:$0xff] %v2287_v50  ;;  %v2289_v0 = vpop.f32.mrb[30].mxu0  ;;  %v632_v31 = vmax.f32 %v2281_v55, %v2285_v10  ;;  %v2293_v15 = vpop.f32.mrb[30].mxu1  ;;  %v680_v40 = vmax.f32 %v2283_v4, %v2287_v50  ;;  %v2922_v10 = vmax.f32 %v2115_v22, %v2119_v24 }
 0x128   : > { %v2297_v62 = vpop.f32.mrb[31].mxu0  ;;  %v2299_v32 = vpop.f32.mrb[31].mxu1  ;;  %v2923_v55 = vmax.f32 %v2125_v27, %v2131_v30  ;;  %v2924_v50 = vmax.f32 %v2139_v34, %v2143_v36 }
 0x129   : > { %2920 = vst [vmem:[#allocation15_spill] sm:$0xff] %v2297_v62  ;;  %2921 = vst [vmem:[#allocation16_spill] sm:$0xff] %v2299_v32  ;;  %v635_v52 = vmax.f32 %v2289_v0, %v2297_v62  ;;  %633 = vmax.xlane.f32.xlu0 %v632_v31  ;;  %v683_v56 = vmax.f32 %v2293_v15, %v2299_v32  ;;  %v2925_v62 = vmax.f32 %v2149_v39, %v2155_v42 }
 0x12a   : > { %v2926_v31 = vmax.f32 %v2163_v46, %v2167_v48 }
 0x12b   : > { %636 = vmax.xlane.f32.xlu1 %v635_v52  ;;  %v2927_v52 = vmax.f32 %v2173_v51, %v2179_v54 }
 0x12d   : > { %639 = vmax.xlane.f32.xlu0 %v2922_v10  ;;  %v2928_v10 = vmax.f32 %v2187_v58, %v2191_v60 }
 0x12f   : > { %642 = vmax.xlane.f32.xlu1 %v2923_v55  ;;  %v2929_v55 = vmax.f32 %v2197_v63, %v2203_v2 }
 0x131   : > { %645 = vmax.xlane.f32.xlu0 %v2924_v50  ;;  %v910_v50 = vsub.f32 1.0, %v2113_v21 }
 0x133   : > { %648 = vmax.xlane.f32.xlu1 %v2925_v62  ;;  %v911_v62 = vsub.f32 1.0, %v2117_v23 }
 0x135   : > { %651 = vmax.xlane.f32.xlu0 %v2926_v31  ;;  %v942_v31 = vsub.f32 1.0, %v2115_v22  ;;  %v914_v22 = vsub.f32 1.0, %v2137_v33  ;;  %v948_v33 = vsub.f32 1.0, %v2149_v39  ;;  %v921_v39 = vsub.f32 1.0, %v2177_v53 }
 0x137   : > { %654 = vmax.xlane.f32.xlu1 %v2927_v52  ;;  %v912_v52 = vsub.f32 1.0, %v2121_v25 }
 0x139   : > { %657 = vmax.xlane.f32.xlu0 %v2928_v10  ;;  %v943_v10 = vsub.f32 1.0, %v2119_v24  ;;  %v2343_v21 = vmax.f32 %v912_v52, 0.0  ;;  %v946_v24 = vsub.f32 1.0, %v2139_v34  ;;  %v919_v34 = vsub.f32 1.0, %v2165_v47 }
 0x13b   : > { %660 = vmax.xlane.f32.xlu1 %v2929_v55  ;;  %v913_v55 = vsub.f32 1.0, %v2129_v29  ;;  %v2346_v23 = vmax.f32 %v943_v10, 0.0  ;;  %v2367_v52 = vmax.f32 %v946_v24, 0.0  ;;  %v954_v24 = vsub.f32 1.0, %v2187_v58 }
 0x13c   : > { %v926_v58 = vsub.f32 1.0, %v2209_v5 }
 0x13d   : > { %663 = vmax.xlane.f32.xlu0 %v662_v12  ;;  %v944_v12 = vsub.f32 1.0, %v2125_v27  ;;  %v2349_v25 = vmax.f32 %v913_v55, 0.0  ;;  %v915_v27 = vsub.f32 1.0, %v2141_v35  ;;  %v950_v35 = vsub.f32 1.0, %v2163_v46 }
 0x13e   : > { %v2380_v46 = vmax.f32 %v948_v33, 0.0  ;;  %v924_v33 = vsub.f32 1.0, %v2193_v61 }
 0x13f   : > { %666 = vmax.xlane.f32.xlu1 %v665_v16  ;;  %v945_v16 = vsub.f32 1.0, %v2131_v30  ;;  %v2352_v29 = vmax.f32 %v944_v12, 0.0  ;;  %v947_v30 = vsub.f32 1.0, %v2143_v36  ;;  %v920_v36 = vsub.f32 1.0, %v2169_v49 }
 0x140   : > { %v953_v49 = vsub.f32 1.0, %v2179_v54  ;;  %v2385_v12 = vmax.f32 %v919_v34, 0.0  ;;  %v923_v54 = vsub.f32 1.0, %v2189_v59  ;;  %v956_v34 = vsub.f32 1.0, %v2197_v63 }
 0x141   : > { %669 = vmax.xlane.f32.xlu0 %v668_v43  ;;  %v917_v43 = vsub.f32 1.0, %v2153_v41  ;;  %v2370_v41 = vmax.f32 %v915_v27, 0.0  ;;  %v2373_v10 = vmax.f32 %v947_v30, 0.0  ;;  %v2391_v53 = vmax.f32 %v920_v36, 0.0 }
 0x142   : > { %v2397_v27 = vmax.f32 %v921_v39, 0.0  ;;  %v958_v59 = vsub.f32 1.0, %v2211_v6  ;;  %v2416_v39 = vmax.f32 %v923_v54, 0.0  ;;  %v928_v63 = vsub.f32 1.0, %v2217_v9 }
 0x143   : > { %672 = vmax.xlane.f32.xlu1 %v671_v3  ;;  %v2357_v3 = vmax.f32 %v945_v16, 0.0  ;;  %v2389_v16 = vmax.f32 %v950_v35, 0.0  ;;  %v957_v35 = vsub.f32 1.0, %v2203_v2  ;;  %v2424_v2 = vmax.f32 %v956_v34, 0.0 }
 0x144   : > { %v2432_v54 = vmax.f32 %v958_v59, 0.0  ;;  %v929_v34 = vsub.f32 1.0, %v2225_v13  ;;  %v964_v13 = vsub.f32 1.0, %v2245_v38 }
 0x145   : > { %675 = vmax.xlane.f32.xlu0 %v674_v44  ;;  %v2337_v44 = vmax.f32 %v910_v50, 0.0  ;;  %v918_v50 = vsub.f32 1.0, %v2161_v45  ;;  %v952_v45 = vsub.f32 1.0, %v2173_v51  ;;  %v922_v51 = vsub.f32 1.0, %v2185_v57  ;;  %2933 = vst [vmem:[#allocation20_spill] sm:$0xff] %v2424_v2 }
 0x146   : > { %2935 = vst [vmem:[#allocation22_spill] sm:$0xff] %v2432_v54 }
 0x147   : > { %678 = vmax.xlane.f32.xlu1 %v677_v28  ;;  %v2339_v28 = vmax.f32 %v911_v62, 0.0  ;;  %v949_v62 = vsub.f32 1.0, %v2155_v42  ;;  %v2378_v42 = vmax.f32 %v917_v43, 0.0  ;;  %v2383_v55 = vmax.f32 %v918_v50, 0.0 }
 0x148   : > { %v2400_v30 = vmax.f32 %v952_v45, 0.0  ;;  %v2404_v50 = vmax.f32 %v953_v49, 0.0  ;;  %v2411_v36 = vmax.f32 %v922_v51, 0.0  ;;  %v2422_v49 = vmax.f32 %v924_v33, 0.0 }
 0x149   : > { %681 = vmax.xlane.f32.xlu0 %v680_v40  ;;  %v2341_v40 = vmax.f32 %v942_v31, 0.0  ;;  %v2364_v31 = vmax.f32 %v914_v22, 0.0  ;;  %v2437_v33 = vmax.f32 %v928_v63, 0.0  ;;  %v963_v63 = vsub.f32 1.0, %v2239_v20 }
 0x14a   : > { %2930 = vst [vmem:[#allocation17_spill] sm:$0xff] %v2404_v50 }
 0x14b   : > { %684 = vmax.xlane.f32.xlu1 %v683_v56  ;;  %v916_v56 = vsub.f32 1.0, %v2145_v37  ;;  %v951_v37 = vsub.f32 1.0, %v2167_v48  ;;  %v2387_v48 = vmax.f32 %v949_v62, 0.0  ;;  %v925_v62 = vsub.f32 1.0, %v2201_v1 }
 0x14c   : > { %v959_v1 = vsub.f32 1.0, %v2215_v8 }
 0x14d   : > { %v2376_v47 = vmax.f32 %v916_v56, 0.0  ;;  %v2394_v22 = vmax.f32 %v951_v37, 0.0  ;;  %v955_v56 = vsub.f32 1.0, %v2191_v60  ;;  %v927_v60 = vsub.f32 1.0, %v2213_v7 }
 0x14e   : > { %v2414_v37 = vmax.f32 %v954_v24, 0.0  ;;  %v2428_v7 = vmax.f32 %v926_v58, 0.0  ;;  %v2430_v24 = vmax.f32 %v957_v35, 0.0  ;;  %v930_v35 = vsub.f32 1.0, %v2233_v17 }
 0x14f   : > { %v2419_v45 = vmax.f32 %v955_v56, 0.0  ;;  %v2434_v9 = vmax.f32 %v927_v60, 0.0  ;;  %v960_v56 = vsub.f32 1.0, %v2221_v11  ;;  %v931_v60 = vsub.f32 1.0, %v2237_v19 }
 0x150   : > { %2931 = vst [vmem:[#allocation18_spill] sm:$0xff] %v2414_v37  ;;  %2934 = vst [vmem:[#allocation21_spill] sm:$0xff] %v2430_v24  ;;  %v932_v11 = vsub.f32 1.0, %v2241_v26 }
 0x151   : > { %2932 = vst [vmem:[#allocation19_spill] sm:$0xff] %v2419_v45  ;;  %v2458_v20 = vmax.f32 %v931_v60, 0.0 }
 0x152   : > { %v2460_v38 = vmax.f32 %v932_v11, 0.0  ;;  %v2946_v11 = vld [vmem:[#allocation6_spill] sm:$0xff] }
 0x17e   : > { %v592_v43 = vpop.xlane.xlu0 %591 }
 0x17f   : > { %v686_v57 = vsub.f32 1.0, %v592_v43  ;;  %v2426_v43 = vmax.f32 %v925_v62, 0.0  ;;  %v961_v62 = vsub.f32 1.0, %v2227_v14  ;;  %v2449_v14 = vmax.f32 %v929_v34, 0.0 }
 0x180   : > { %v2466_v34 = vmax.f32 %v964_v13, 0.0 }
 0x181   : > { %v718_v61 = vmax.f32 %v686_v57, 0.0 }
 0x182   : > { %v595_v5 = vpop.xlane.xlu0 %594  ;;  %2942 = vst [vmem:[#allocation27_spill] sm:$0xff] %v2466_v34  ;;  %v2948_v34 = vld [vmem:[#allocation10_spill] sm:$0xff] }
 0x183   : > { %v750_v6 = vmul.f32 0.5, %v718_v61  ;;  %v687_v51 = vsub.f32 1.0, %v595_v5  ;;  %v2440_v61 = vmax.f32 %v959_v1, 0.0 }
 0x185   : > { %v782_v8 = vadd.f32 1e-05, %v750_v6  ;;  %v719_v57 = vmax.f32 %v687_v51, 0.0  ;;  %2936 = vst [vmem:[#allocation23_spill] sm:$0xff] %v2440_v61  ;;  %v962_v6 = vsub.f32 1.0, %v2235_v18  ;;  %v2937_v61 = vld [vmem:[#allocation2_spill] sm:$0xff] }
 0x186   : > { %v598_v58 = vpop.xlane.xlu1 %597  ;;  %v933_v17 = vsub.f32 1.0, %v2937_v61 }
 0x187   : > { %v814_v5 = vmul.f32 0.1, %v782_v8  ;;  %v751_v59 = vmul.f32 0.5, %v719_v57  ;;  %v688_v54 = vsub.f32 1.0, %v598_v58  ;;  %v2452_v8 = vmax.f32 %v960_v56, 0.0 }
 0x188   : > { %v2454_v57 = vmax.f32 %v961_v62, 0.0  ;;  %v2456_v58 = vmax.f32 %v930_v35, 0.0  ;;  %v2468_v62 = vmax.f32 %v933_v17, 0.0  ;;  %v2943_v35 = vld [vmem:[#allocation4_spill] sm:$0xff]  ;;  %v2950_v17 = vld [vmem:[#allocation9_spill] sm:$0xff] }
 0x189   : > { %1755 = vrcp.f32 %v814_v5  ;;  %v783_v1 = vadd.f32 1e-05, %v751_v59  ;;  %v720_v51 = vmax.f32 %v688_v54, 0.0  ;;  %2938 = vst [vmem:[#allocation2_spill] sm:$0xff] %v2452_v8  ;;  %v2462_v5 = vmax.f32 %v962_v6, 0.0 }
 0x18a   : > { %2939 = vst [vmem:[#allocation24_spill] sm:$0xff] %v2454_v57  ;;  %v601_v19 = vpop.xlane.xlu1 %600  ;;  %v2464_v54 = vmax.f32 %v963_v63, 0.0  ;;  %v934_v59 = vsub.f32 1.0, %v2943_v35  ;;  %v935_v8 = vsub.f32 1.0, %v2946_v11  ;;  %v968_v2 = vsub.f32 1.0, %v2950_v17 }
 0x18b   : > { %v815_v26 = vmul.f32 0.1, %v783_v1  ;;  %v752_v18 = vmul.f32 0.5, %v720_v51  ;;  %v689_v24 = vsub.f32 1.0, %v601_v19  ;;  %2940 = vst [vmem:[#allocation25_spill] sm:$0xff] %v2462_v5  ;;  %v2944_v1 = vld [vmem:[#allocation3_spill] sm:$0xff] }
 0x18c   : > { %2941 = vst [vmem:[#allocation26_spill] sm:$0xff] %v2464_v54  ;;  %v965_v51 = vsub.f32 1.0, %v2944_v1  ;;  %v2945_v19 = vld [vmem:[#allocation5_spill] sm:$0xff]  ;;  %v2947_v54 = vld [vmem:[#allocation8_spill] sm:$0xff]  ;;  %v2485_v11 = vmax.f32 %v935_v8, 0.0 }
 0x18d   : > { %1757 = vrcp.f32 %v815_v26  ;;  %v784_v56 = vadd.f32 1e-05, %v752_v18  ;;  %v721_v61 = vmax.f32 %v689_v24, 0.0  ;;  %v966_v60 = vsub.f32 1.0, %v2945_v19  ;;  %v2949_v18 = vld [vmem:[#allocation7_spill] sm:$0xff] }
 0x18e   : > { %v604_v57 = vpop.xlane.xlu0 %603  ;;  %v936_v13 = vsub.f32 1.0, %v2947_v54  ;;  %v937_v26 = vsub.f32 1.0, %v2948_v34  ;;  %v967_v24 = vsub.f32 1.0, %v2949_v18  ;;  %v2478_v19 = vmax.f32 %v934_v59, 0.0 }
 0x18f   : > { %v816_v6 = vmul.f32 0.1, %v784_v56  ;;  %v753_v5 = vmul.f32 0.5, %v721_v61  ;;  %v690_v63 = vsub.f32 1.0, %v604_v57  ;;  %v2480_v32 = vmax.f32 %v965_v51, 0.0  ;;  %v2953_v57 = vld [vmem:[#allocation11_spill] sm:$0xff] }
 0x190   : > { %v607_v45 = vpop.xlane.xlu1 %606  ;;  %v2482_v56 = vmax.f32 %v966_v60, 0.0  ;;  %v969_v61 = vsub.f32 1.0, %v2953_v57  ;;  %v2487_v17 = vmax.f32 %v936_v13, 0.0  ;;  %v2493_v59 = vmax.f32 %v937_v26, 0.0  ;;  %v2958_v26 = vld [vmem:[#allocation13_spill] sm:$0xff] }
 0x191   : > { %1759 = vrcp.f32 %v816_v6  ;;  %v785_v35 = vadd.f32 1e-05, %v753_v5  ;;  %v722_v1 = vmax.f32 %v690_v63, 0.0  ;;  %v691_v37 = vsub.f32 1.0, %v607_v45  ;;  %2951 = vst [vmem:[#allocation4_spill] sm:$0xff] %v2480_v32  ;;  %v2956_v63 = vld [vmem:[#allocation12_spill] sm:$0xff] }
 0x192   : > { %2952 = vst [vmem:[#allocation3_spill] sm:$0xff] %v2482_v56  ;;  %v2489_v6 = vmax.f32 %v967_v24, 0.0  ;;  %v2491_v5 = vmax.f32 %v968_v2, 0.0  ;;  %v938_v57 = vsub.f32 1.0, %v2956_v63  ;;  %v2496_v56 = vmax.f32 %v969_v61, 0.0 }
 0x193   : > { %v1756_v54 = vpop.eup %1755  ;;  %v817_v34 = vmul.f32 0.1, %v785_v35  ;;  %v754_v18 = vmul.f32 0.5, %v722_v1  ;;  %v723_v50 = vmax.f32 %v691_v37, 0.0  ;;  %v970_v24 = vsub.f32 1.0, %v2283_v4 }
 0x194   : > { %2954 = vst [vmem:[#allocation5_spill] sm:$0xff] %v2489_v6  ;;  %2955 = vst [vmem:[#allocation6_spill] sm:$0xff] %v2491_v5  ;;  %v878_v45 = vmul.f32 0.5, %v1756_v54  ;;  %v939_v5 = vsub.f32 1.0, %v2958_v26 }
 0x195   : > { %1761 = vrcp.f32 %v817_v34  ;;  %v786_v51 = vadd.f32 1e-05, %v754_v18  ;;  %v755_v60 = vmul.f32 0.5, %v723_v50  ;;  %2957 = vst [vmem:[#allocation8_spill] sm:$0xff] %v2496_v56 }
 0x196   : > { %v1038_v8 = vmul.f32 %v2337_v44, %v878_v45  ;;  %v1039_v37 = vmul.f32 %v2339_v28, %v878_v45  ;;  %v610_v13 = vpop.xlane.xlu0 %609  ;;  %v2959_v44 = vld [vmem:[#allocation14_spill] sm:$0xff] }
 0x197   : > { %v1758_v35 = vpop.eup %1757  ;;  %v818_v2 = vmul.f32 0.1, %v786_v51  ;;  %v787_v1 = vadd.f32 1e-05, %v755_v60  ;;  %v692_v54 = vsub.f32 1.0, %v610_v13 }
 0x198   : > { %v1102_v34 = vsub.f32 10.0, %v1038_v8  ;;  %v1103_v18 = vsub.f32 10.0, %v1039_v37  ;;  %v879_v50 = vmul.f32 0.5, %v1758_v35  ;;  %v613_v6 = vpop.xlane.xlu1 %612  ;;  %v2505_v8 = vmax.f32 %v938_v57, 0.0 }
 0x199   : > { %1763 = vrcp.f32 %v818_v2  ;;  %v819_v61 = vmul.f32 0.1, %v787_v1  ;;  %v724_v63 = vmax.f32 %v692_v54, 0.0  ;;  %v693_v56 = vsub.f32 1.0, %v613_v6 }
 0x19a   : > { %v1166_v28 = vmul.f32 1.442695, %v1102_v34  ;;  %v1040_v45 = vmul.f32 %v2343_v21, %v879_v50  ;;  %v1041_v4 = vmul.f32 %v2349_v25, %v879_v50  ;;  %v1168_v60 = vmul.f32 1.442695, %v1103_v18 }
 0x19b   : > { %v1760_v51 = vpop.eup %1759  ;;  %1765 = vrcp.f32 %v819_v61  ;;  %v756_v13 = vmul.f32 0.5, %v724_v63  ;;  %v725_v26 = vmax.f32 %v693_v56, 0.0  ;;  %v940_v1 = vsub.f32 1.0, %v2289_v0 }
 0x19c   : > { %v1104_v37 = vsub.f32 10.0, %v1040_v45  ;;  %v1105_v35 = vsub.f32 10.0, %v1041_v4  ;;  %v880_v2 = vmul.f32 0.5, %v1760_v51  ;;  %1767 = vpow2.f32 %v1166_v28 }
 0x19d   : > { %v788_v6 = vadd.f32 1e-05, %v756_v13  ;;  %v757_v54 = vmul.f32 0.5, %v725_v26  ;;  %1769 = vpow2.f32 %v1168_v60  ;;  %v2510_v28 = vmax.f32 %v970_v24, 0.0 }
 0x19e   : > { %v1170_v34 = vmul.f32 1.442695, %v1104_v37  ;;  %v1172_v32 = vmul.f32 1.442695, %v1105_v35  ;;  %v1042_v21 = vmul.f32 %v2364_v31, %v880_v2  ;;  %v1043_v25 = vmul.f32 %v2370_v41, %v880_v2  ;;  %v616_v18 = vpop.xlane.xlu0 %615 }
 0x19f   : > { %v1762_v50 = vpop.eup %1761  ;;  %v820_v56 = vmul.f32 0.1, %v788_v6  ;;  %v789_v57 = vadd.f32 1e-05, %v757_v54  ;;  %v694_v61 = vsub.f32 1.0, %v616_v18 }
 0x1a0   : > { %1771 = vpow2.f32 %v1170_v34  ;;  %v1106_v63 = vsub.f32 10.0, %v1042_v21  ;;  %v1107_v45 = vsub.f32 10.0, %v1043_v25  ;;  %v881_v4 = vmul.f32 0.5, %v1762_v50  ;;  %v619_v51 = vpop.xlane.xlu1 %618 }
 0x1a1   : > { %1773 = vpow2.f32 %v1172_v32  ;;  %v726_v13 = vmax.f32 %v694_v61, 0.0  ;;  %v695_v26 = vsub.f32 1.0, %v619_v51  ;;  %v821_v2 = vmul.f32 0.1, %v789_v57 }
 0x1a2   : > { %v1174_v37 = vmul.f32 1.442695, %v1106_v63  ;;  %v1176_v31 = vmul.f32 1.442695, %v1107_v45  ;;  %v1044_v41 = vmul.f32 %v2376_v47, %v881_v4  ;;  %v1045_v35 = vmul.f32 %v2378_v42, %v881_v4 }
 0x1a3   : > { %v1764_v60 = vpop.eup %1763  ;;  %1775 = vrcp.f32 %v820_v56  ;;  %v758_v6 = vmul.f32 0.5, %v726_v13  ;;  %v727_v54 = vmax.f32 %v695_v26, 0.0  ;;  %v2515_v61 = vmax.f32 %v939_v5, 0.0 }
 0x1a4   : > { %1777 = vpow2.f32 %v1174_v37  ;;  %v1108_v34 = vsub.f32 10.0, %v1044_v41  ;;  %v1109_v21 = vsub.f32 10.0, %v1045_v35  ;;  %v882_v25 = vmul.f32 0.5, %v1764_v60 }
 0x1a5   : > { %v1766_v24 = vpop.eup %1765  ;;  %1779 = vpow2.f32 %v1176_v31  ;;  %v790_v18 = vadd.f32 1e-05, %v758_v6  ;;  %v759_v50 = vmul.f32 0.5, %v727_v54 }
 0x1a6   : > { %v1178_v47 = vmul.f32 1.442695, %v1108_v34  ;;  %v1046_v42 = vmul.f32 %v2383_v55, %v882_v25  ;;  %v1047_v56 = vmul.f32 %v2385_v12, %v882_v25  ;;  %v622_v57 = vpop.xlane.xlu0 %621  ;;  %v2519_v63 = vpop.eup %1767  ;;  %v883_v45 = vmul.f32 0.5, %v1766_v24 }
 0x1a7   : > { %1781 = vrcp.f32 %v821_v2  ;;  %v822_v4 = vmul.f32 0.1, %v790_v18  ;;  %v791_v51 = vadd.f32 1e-05, %v759_v50  ;;  %v1180_v13 = vmul.f32 1.442695, %v1109_v21  ;;  %v2521_v35 = vpop.eup %1769 }
 0x1a8   : > { %v1110_v26 = vsub.f32 10.0, %v1046_v42  ;;  %v1111_v37 = vsub.f32 10.0, %v1047_v56  ;;  %v696_v31 = vsub.f32 1.0, %v622_v57  ;;  %v625_v41 = vpop.xlane.xlu1 %624  ;;  %1783 = vpow2.f32 %v1178_v47 }
 0x1a9   : > { %v1048_v5 = vmul.f32 %v2391_v53, %v883_v45  ;;  %v1049_v55 = vmul.f32 %v2397_v27, %v883_v45  ;;  %v823_v12 = vmul.f32 0.1, %v791_v51  ;;  %1785 = vrcp.f32 %v822_v4  ;;  %v2960_v45 = vld [vmem:[#allocation15_spill] sm:$0xff] }
 0x1aa   : > { %v2525_v60 = vpop.eup %1771  ;;  %v1182_v6 = vmul.f32 1.442695, %v1110_v26  ;;  %v1184_v54 = vmul.f32 1.442695, %v1111_v37  ;;  %v728_v2 = vmax.f32 %v696_v31, 0.0  ;;  %v697_v24 = vsub.f32 1.0, %v625_v41 }
 0x1ab   : > { %v2527_v34 = vpop.eup %1773  ;;  %v1112_v21 = vsub.f32 10.0, %v1048_v5  ;;  %v1113_v25 = vsub.f32 10.0, %v1049_v55  ;;  %1787 = vrcp.f32 %v823_v12  ;;  %v1294_v53 = vadd.f32 %v2521_v35, %v2519_v63 }
 0x1ac   : > { %1789 = vpow2.f32 %v1180_v13  ;;  %v760_v18 = vmul.f32 0.5, %v728_v2  ;;  %v1297_v27 = vadd.f32 %v2527_v34, %v2525_v60  ;;  %v729_v56 = vmax.f32 %v697_v24, 0.0 }
 0x1ad   : > { %v1776_v50 = vpop.eup %1775  ;;  %1791 = vpow2.f32 %v1182_v6  ;;  %v1186_v47 = vmul.f32 1.442695, %v1112_v21  ;;  %v1188_v42 = vmul.f32 1.442695, %v1113_v25  ;;  %v941_v4 = vsub.f32 1.0, %v2960_v45  ;;  %1295 = vadd.xlane.f32.xlu0 %v1294_v53 }
 0x1ae   : > { %v2533_v57 = vpop.eup %1777  ;;  %1793 = vpow2.f32 %v1184_v54  ;;  %v884_v51 = vmul.f32 0.5, %v1776_v50  ;;  %v792_v26 = vadd.f32 1e-05, %v760_v18  ;;  %1298 = vadd.xlane.f32.xlu1 %v1297_v27  ;;  %v628_v13 = vpop.xlane.xlu0 %627  ;;  %v2540_v31 = vmax.f32 %v940_v1, 0.0 }
 0x1af   : > { %v2536_v37 = vpop.eup %1779  ;;  %1795 = vpow2.f32 %v1186_v47  ;;  %v761_v41 = vmul.f32 0.5, %v729_v56  ;;  %v698_v5 = vsub.f32 1.0, %v628_v13  ;;  %v2548_v50 = vmax.f32 %v941_v4, 0.0 }
 0x1b0   : > { %1797 = vpow2.f32 %v1188_v42  ;;  %v1050_v55 = vmul.f32 %v2411_v36, %v884_v51  ;;  %v1051_v12 = vmul.f32 %v2416_v39, %v884_v51  ;;  %v824_v6 = vmul.f32 0.1, %v792_v26  ;;  %v631_v54 = vpop.xlane.xlu1 %630 }
 0x1b1   : > { %v1782_v2 = vpop.eup %1781  ;;  %v793_v21 = vadd.f32 1e-05, %v761_v41  ;;  %v730_v25 = vmax.f32 %v698_v5, 0.0  ;;  %v699_v24 = vsub.f32 1.0, %v631_v54  ;;  %v1300_v18 = vadd.f32 %v2536_v37, %v2533_v57 }
 0x1b2   : > { %v1114_v0 = vsub.f32 10.0, %v1050_v55  ;;  %v1115_v1 = vsub.f32 10.0, %v1051_v12  ;;  %v885_v53 = vmul.f32 0.5, %v1782_v2  ;;  %1799 = vrcp.f32 %v824_v6  ;;  %v2546_v27 = vpop.eup %1783 }
 0x1b3   : > { %v825_v36 = vmul.f32 0.1, %v793_v21  ;;  %v762_v47 = vmul.f32 0.5, %v730_v25  ;;  %v731_v39 = vmax.f32 %v699_v24, 0.0  ;;  %1301 = vadd.xlane.f32.xlu0 %v1300_v18  ;;  %v1786_v42 = vpop.eup %1785 }
 0x1b4   : > { %v1190_v56 = vmul.f32 1.442695, %v1114_v0  ;;  %v1192_v45 = vmul.f32 1.442695, %v1115_v1  ;;  %v1052_v51 = vmul.f32 %v2422_v49, %v885_v53  ;;  %v1053_v26 = vmul.f32 %v2426_v43, %v885_v53 }
 0x1b5   : > { %v1788_v13 = vpop.eup %1787  ;;  %v886_v41 = vmul.f32 0.5, %v1786_v42  ;;  %1801 = vrcp.f32 %v825_v36  ;;  %v794_v5 = vadd.f32 1e-05, %v762_v47  ;;  %v763_v55 = vmul.f32 0.5, %v731_v39 }
 0x1b6   : > { %v2552_v12 = vpop.eup %1789  ;;  %1803 = vpow2.f32 %v1190_v56  ;;  %v1116_v4 = vsub.f32 10.0, %v1052_v51  ;;  %v1117_v6 = vsub.f32 10.0, %v1053_v26  ;;  %v887_v54 = vmul.f32 0.5, %v1788_v13  ;;  %v634_v2 = vpop.xlane.xlu0 %633 }
 0x1b7   : > { %v2554_v21 = vpop.eup %1791  ;;  %1805 = vpow2.f32 %v1192_v45  ;;  %v1054_v25 = vmul.f32 %v2428_v7, %v886_v41  ;;  %v1055_v49 = vmul.f32 %v2434_v9, %v886_v41  ;;  %v826_v43 = vmul.f32 0.1, %v794_v5 }
 0x1b8   : > { %v2558_v24 = vpop.eup %1793  ;;  %v1194_v18 = vmul.f32 1.442695, %v1116_v4  ;;  %v1196_v0 = vmul.f32 1.442695, %v1117_v6  ;;  %v1056_v1 = vmul.f32 %v2437_v33, %v887_v54  ;;  %v1057_v53 = vmul.f32 %v2449_v14, %v887_v54  ;;  %v637_v36 = vpop.xlane.xlu1 %636 }
 0x1b9   : > { %v2562_v47 = vpop.eup %1795  ;;  %v1118_v39 = vsub.f32 10.0, %v1054_v25  ;;  %v1119_v42 = vsub.f32 10.0, %v1055_v49  ;;  %1807 = vrcp.f32 %v826_v43  ;;  %v795_v56 = vadd.f32 1e-05, %v763_v55 }
 0x1ba   : > { %v2564_v45 = vpop.eup %1797  ;;  %1809 = vpow2.f32 %v1194_v18  ;;  %v1120_v7 = vsub.f32 10.0, %v1056_v1  ;;  %v1121_v9 = vsub.f32 10.0, %v1057_v53  ;;  %v1303_v51 = vadd.f32 %v2552_v12, %v2546_v27  ;;  %v640_v26 = vpop.xlane.xlu0 %639 }
 0x1bb   : > { %1811 = vpow2.f32 %v1196_v0  ;;  %v1198_v33 = vmul.f32 1.442695, %v1118_v39  ;;  %v1200_v13 = vmul.f32 1.442695, %v1119_v42  ;;  %v827_v14 = vmul.f32 0.1, %v795_v56 }
 0x1bc   : > { %v1800_v41 = vpop.eup %1799  ;;  %v1202_v5 = vmul.f32 1.442695, %v1120_v7  ;;  %v1204_v4 = vmul.f32 1.442695, %v1121_v9  ;;  %1304 = vadd.xlane.f32.xlu1 %v1303_v51  ;;  %v700_v6 = vsub.f32 1.0, %v634_v2  ;;  %v701_v54 = vsub.f32 1.0, %v637_v36  ;;  %v643_v55 = vpop.xlane.xlu1 %642 }
 0x1bd   : > { %1813 = vpow2.f32 %v1198_v33  ;;  %v888_v25 = vmul.f32 0.5, %v1800_v41  ;;  %v1306_v49 = vadd.f32 %v2558_v24, %v2554_v21  ;;  %v702_v43 = vsub.f32 1.0, %v640_v26 }
 0x1be   : > { %1815 = vpow2.f32 %v1200_v13  ;;  %v732_v18 = vmax.f32 %v700_v6, 0.0  ;;  %v733_v1 = vmax.f32 %v701_v54, 0.0  ;;  %v1309_v0 = vadd.f32 %v2564_v45, %v2562_v47  ;;  %v646_v42 = vpop.xlane.xlu0 %645 }
 0x1bf   : > { %v1802_v53 = vpop.eup %1801  ;;  %1817 = vpow2.f32 %v1202_v5  ;;  %v1058_v39 = vmul.f32 %v2456_v58, %v888_v25  ;;  %v1059_v2 = vmul.f32 %v2458_v20, %v888_v25  ;;  %1307 = vadd.xlane.f32.xlu0 %v1306_v49  ;;  %v734_v36 = vmax.f32 %v702_v43, 0.0 }
 0x1c0   : > { %v2574_v56 = vpop.eup %1803  ;;  %1819 = vpow2.f32 %v1204_v4  ;;  %v889_v7 = vmul.f32 0.5, %v1802_v53  ;;  %v764_v9 = vmul.f32 0.5, %v732_v18  ;;  %v765_v51 = vmul.f32 0.5, %v733_v1  ;;  %1310 = vadd.xlane.f32.xlu1 %v1309_v0  ;;  %v649_v54 = vpop.xlane.xlu1 %648 }
 0x1c1   : > { %v2576_v26 = vpop.eup %1805  ;;  %v1122_v33 = vsub.f32 10.0, %v1058_v39  ;;  %v1123_v13 = vsub.f32 10.0, %v1059_v2  ;;  %1821 = vrcp.f32 %v827_v14  ;;  %v766_v41 = vmul.f32 0.5, %v734_v36 }
 0x1c2   : > { %v1060_v58 = vmul.f32 %v2460_v38, %v889_v7  ;;  %v1061_v20 = vmul.f32 %v2468_v62, %v889_v7  ;;  %v796_v5 = vadd.f32 1e-05, %v764_v9  ;;  %v797_v6 = vadd.f32 1e-05, %v765_v51  ;;  %v652_v7 = vpop.xlane.xlu0 %651 }
 0x1c3   : > { %v1808_v25 = vpop.eup %1807  ;;  %v1206_v49 = vmul.f32 1.442695, %v1122_v33  ;;  %v1208_v4 = vmul.f32 1.442695, %v1123_v13  ;;  %v798_v43 = vadd.f32 1e-05, %v766_v41  ;;  %v1312_v18 = vadd.f32 %v2576_v26, %v2574_v56 }
 0x1c4   : > { %v2582_v1 = vpop.eup %1809  ;;  %v1124_v0 = vsub.f32 10.0, %v1060_v58  ;;  %v1125_v53 = vsub.f32 10.0, %v1061_v20  ;;  %v890_v14 = vmul.f32 0.5, %v1808_v25  ;;  %v828_v39 = vmul.f32 0.1, %v796_v5 }
 0x1c5   : > { %v2584_v2 = vpop.eup %1811  ;;  %1823 = vpow2.f32 %v1206_v49  ;;  %v829_v38 = vmul.f32 0.1, %v797_v6  ;;  %v830_v62 = vmul.f32 0.1, %v798_v43  ;;  %v703_v36 = vsub.f32 1.0, %v643_v55  ;;  %1313 = vadd.xlane.f32.xlu0 %v1312_v18  ;;  %v655_v49 = vpop.xlane.xlu1 %654 }
 0x1c6   : > { %1825 = vpow2.f32 %v1208_v4  ;;  %v1210_v9 = vmul.f32 1.442695, %v1124_v0  ;;  %v1212_v51 = vmul.f32 1.442695, %v1125_v53  ;;  %v1062_v33 = vmul.f32 %v2478_v19, %v890_v14  ;;  %v658_v32 = vpop.xlane.xlu0 %657 }
 0x1c7   : > { %v2587_v13 = vpop.eup %1813  ;;  %v1063_v41 = vmul.f32 %v2485_v11, %v890_v14  ;;  %1827 = vrcp.f32 %v828_v39  ;;  %v735_v58 = vmax.f32 %v703_v36, 0.0  ;;  %v704_v20 = vsub.f32 1.0, %v646_v42 }
 0x1c8   : > { %v2590_v5 = vpop.eup %1815  ;;  %1829 = vpow2.f32 %v1210_v9  ;;  %v1126_v6 = vsub.f32 10.0, %v1062_v33  ;;  %v705_v25 = vsub.f32 1.0, %v649_v54  ;;  %v706_v55 = vsub.f32 1.0, %v652_v7 }
 0x1c9   : > { %v2592_v43 = vpop.eup %1817  ;;  %1831 = vpow2.f32 %v1212_v51  ;;  %v1127_v4 = vsub.f32 10.0, %v1063_v41  ;;  %v767_v18 = vmul.f32 0.5, %v735_v58  ;;  %v736_v19 = vmax.f32 %v704_v20, 0.0 }
 0x1ca   : > { %v2594_v0 = vpop.eup %1819  ;;  %v1214_v53 = vmul.f32 1.442695, %v1126_v6  ;;  %1833 = vrcp.f32 %v829_v38  ;;  %v737_v11 = vmax.f32 %v705_v25, 0.0  ;;  %v738_v14 = vmax.f32 %v706_v55, 0.0 }
 0x1cb   : > { %v1822_v42 = vpop.eup %1821  ;;  %v1216_v39 = vmul.f32 1.442695, %v1127_v4  ;;  %1835 = vrcp.f32 %v830_v62  ;;  %v799_v36 = vadd.f32 1e-05, %v767_v18  ;;  %v768_v9 = vmul.f32 0.5, %v736_v19  ;;  %v661_v62 = vpop.xlane.xlu1 %660 }
 0x1cc   : > { %1837 = vpow2.f32 %v1214_v53  ;;  %v891_v54 = vmul.f32 0.5, %v1822_v42  ;;  %v769_v7 = vmul.f32 0.5, %v737_v11  ;;  %v770_v33 = vmul.f32 0.5, %v738_v14 }
 0x1cd   : > { %1839 = vpow2.f32 %v1216_v39  ;;  %v831_v51 = vmul.f32 0.1, %v799_v36  ;;  %v800_v41 = vadd.f32 1e-05, %v768_v9  ;;  %v1315_v58 = vadd.f32 %v2584_v2, %v2582_v1 }
 0x1ce   : > { %v1064_v38 = vmul.f32 %v2487_v17, %v891_v54  ;;  %v1065_v20 = vmul.f32 %v2493_v59, %v891_v54  ;;  %v801_v6 = vadd.f32 1e-05, %v769_v7  ;;  %v802_v25 = vadd.f32 1e-05, %v770_v33 }
 0x1cf   : > { %v2600_v55 = vpop.eup %1823  ;;  %1841 = vrcp.f32 %v831_v51  ;;  %v832_v4 = vmul.f32 0.1, %v800_v41  ;;  %1316 = vadd.xlane.f32.xlu1 %v1315_v58  ;;  %v707_v18 = vsub.f32 1.0, %v655_v49  ;;  %v708_v19 = vsub.f32 1.0, %v658_v32 }
 0x1d0   : > { %v2602_v53 = vpop.eup %1825  ;;  %v1128_v11 = vsub.f32 10.0, %v1064_v38  ;;  %v1129_v14 = vsub.f32 10.0, %v1065_v20  ;;  %v833_v42 = vmul.f32 0.1, %v801_v6  ;;  %v834_v39 = vmul.f32 0.1, %v802_v25 }
 0x1d1   : > { %v1828_v36 = vpop.eup %1827  ;;  %1843 = vrcp.f32 %v832_v4  ;;  %v739_v17 = vmax.f32 %v707_v18, 0.0  ;;  %v740_v59 = vmax.f32 %v708_v19, 0.0  ;;  %v709_v9 = vsub.f32 1.0, %v661_v62 }
 0x1d2   : > { %v2604_v54 = vpop.eup %1829  ;;  %v1218_v7 = vmul.f32 1.442695, %v1128_v11  ;;  %v1220_v33 = vmul.f32 1.442695, %v1129_v14  ;;  %v892_v51 = vmul.f32 0.5, %v1828_v36  ;;  %1845 = vrcp.f32 %v833_v42 }
 0x1d3   : > { %v2606_v41 = vpop.eup %1831  ;;  %1847 = vrcp.f32 %v834_v39  ;;  %v771_v32 = vmul.f32 0.5, %v739_v17  ;;  %v772_v49 = vmul.f32 0.5, %v740_v59  ;;  %v741_v58 = vmax.f32 %v709_v9, 0.0 }
 0x1d4   : > { %v1834_v38 = vpop.eup %1833  ;;  %1849 = vpow2.f32 %v1218_v7  ;;  %v1066_v20 = vmul.f32 %v2505_v8, %v892_v51  ;;  %v1067_v6 = vmul.f32 %v2515_v61, %v892_v51  ;;  %v1318_v25 = vadd.f32 %v2590_v5, %v2587_v13 }
 0x1d5   : > { %v1836_v62 = vpop.eup %1835  ;;  %1851 = vpow2.f32 %v1220_v33  ;;  %v893_v4 = vmul.f32 0.5, %v1834_v38  ;;  %v803_v18 = vadd.f32 1e-05, %v771_v32  ;;  %v804_v19 = vadd.f32 1e-05, %v772_v49 }
 0x1d6   : > { %v2612_v11 = vpop.eup %1837  ;;  %v1130_v14 = vsub.f32 10.0, %v1066_v20  ;;  %v1131_v42 = vsub.f32 10.0, %v1067_v6  ;;  %v894_v39 = vmul.f32 0.5, %v1836_v62  ;;  %v773_v36 = vmul.f32 0.5, %v741_v58  ;;  %1319 = vadd.xlane.f32.xlu0 %v1318_v25  ;;  %v664_v62 = vpop.xlane.xlu0 %663 }
 0x1d7   : > { %v2614_v17 = vpop.eup %1839  ;;  %v1068_v8 = vmul.f32 %v2540_v31, %v893_v4  ;;  %v1069_v61 = vmul.f32 %v2548_v50, %v893_v4  ;;  %v835_v59 = vmul.f32 0.1, %v803_v18  ;;  %v2618_v9 = vmul.f32 0.1, %v804_v19  ;;  %v2622_v50 = vpop.xlane.xlu1 %666 }
 0x1d8   : > { %v1222_v7 = vmul.f32 1.442695, %v1130_v14  ;;  %v1224_v33 = vmul.f32 1.442695, %v1131_v42  ;;  %v1070_v51 = vmul.f32 %v2341_v40, %v894_v39  ;;  %v1071_v32 = vmul.f32 %v2346_v23, %v894_v39 }
 0x1d9   : > { %v1842_v49 = vpop.eup %1841  ;;  %v1132_v38 = vsub.f32 10.0, %v1068_v8  ;;  %v1133_v20 = vsub.f32 10.0, %v1069_v61  ;;  %1853 = vrcp.f32 %v835_v59  ;;  %v805_v58 = vadd.f32 1e-05, %v773_v36 }
 0x1da   : > { %1855 = vpow2.f32 %v1222_v7  ;;  %v1134_v6 = vsub.f32 10.0, %v1070_v51  ;;  %v1135_v25 = vsub.f32 10.0, %v1071_v32  ;;  %v895_v31 = vmul.f32 0.5, %v1842_v49 }
 0x1db   : > { %v1844_v4 = vpop.eup %1843  ;;  %1857 = vpow2.f32 %v1224_v33  ;;  %v1226_v18 = vmul.f32 1.442695, %v1132_v38  ;;  %v1228_v19 = vmul.f32 1.442695, %v1133_v20  ;;  %v2624_v14 = vmul.f32 0.1, %v805_v58 }
 0x1dc   : > { %v1846_v40 = vpop.eup %1845  ;;  %v1230_v23 = vmul.f32 1.442695, %v1134_v6  ;;  %v1232_v42 = vmul.f32 1.442695, %v1135_v25  ;;  %v1072_v39 = vmul.f32 %v2352_v29, %v895_v31  ;;  %v1073_v36 = vmul.f32 %v2357_v3, %v895_v31  ;;  %v670_v31 = vpop.xlane.xlu0 %669 }
 0x1dd   : > { %v1848_v8 = vpop.eup %1847  ;;  %1859 = vpow2.f32 %v1226_v18  ;;  %v896_v61 = vmul.f32 0.5, %v1844_v4  ;;  %v897_v59 = vmul.f32 0.5, %v1846_v40  ;;  %v710_v7 = vsub.f32 1.0, %v664_v62  ;;  %v673_v62 = vpop.xlane.xlu1 %672 }
 0x1de   : > { %v2628_v51 = vpop.eup %1849  ;;  %1861 = vpow2.f32 %v1228_v19  ;;  %v1136_v33 = vsub.f32 10.0, %v1072_v39  ;;  %v1137_v32 = vsub.f32 10.0, %v1073_v36  ;;  %v898_v49 = vmul.f32 0.5, %v1848_v8 }
 0x1df   : > { %v2630_v38 = vpop.eup %1851  ;;  %1863 = vpow2.f32 %v1230_v23  ;;  %v1074_v20 = vmul.f32 %v2367_v52, %v896_v61  ;;  %v1075_v29 = vmul.f32 %v2373_v10, %v896_v61  ;;  %v1076_v3 = vmul.f32 %v2380_v46, %v897_v59 }
 0x1e0   : > { %1865 = vpow2.f32 %v1232_v42  ;;  %v1234_v58 = vmul.f32 1.442695, %v1136_v33  ;;  %v1236_v6 = vmul.f32 1.442695, %v1137_v32  ;;  %v1077_v25 = vmul.f32 %v2387_v48, %v897_v59 }
 0x1e1   : > { %v1138_v4 = vsub.f32 10.0, %v1074_v20  ;;  %v1139_v18 = vsub.f32 10.0, %v1075_v29  ;;  %v1140_v19 = vsub.f32 10.0, %v1076_v3  ;;  %v1078_v40 = vmul.f32 %v2389_v16, %v898_v49  ;;  %v676_v3 = vpop.xlane.xlu0 %675 }
 0x1e2   : > { %1867 = vpow2.f32 %v1234_v58  ;;  %v1141_v23 = vsub.f32 10.0, %v1077_v25  ;;  %v1079_v52 = vmul.f32 %v2394_v22, %v898_v49  ;;  %v742_v39 = vmax.f32 %v710_v7, 0.0  ;;  %v679_v58 = vpop.xlane.xlu1 %678  ;;  %v2962_v25 = vld [vmem:[#allocation17_spill] sm:$0xff] }
 0x1e3   : > { %v1854_v10 = vpop.eup %1853  ;;  %1869 = vpow2.f32 %v1236_v6  ;;  %v1238_v46 = vmul.f32 1.442695, %v1138_v4  ;;  %v1240_v42 = vmul.f32 1.442695, %v1139_v18  ;;  %v1242_v36 = vmul.f32 1.442695, %v1140_v19 }
 0x1e4   : > { %v2638_v8 = vpop.eup %1855  ;;  %v1244_v48 = vmul.f32 1.442695, %v1141_v23  ;;  %v1142_v61 = vsub.f32 10.0, %v1078_v40  ;;  %v1143_v59 = vsub.f32 10.0, %v1079_v52  ;;  %v899_v33 = vmul.f32 0.5, %v1854_v10 }
 0x1e5   : > { %v2640_v32 = vpop.eup %1857  ;;  %1871 = vpow2.f32 %v1238_v46  ;;  %v774_v16 = vmul.f32 0.5, %v742_v39  ;;  %v1321_v20 = vadd.f32 %v2594_v0, %v2592_v43  ;;  %v711_v22 = vsub.f32 1.0, %v2622_v50 }
 0x1e6   : > { %2961 = vst [vmem:[#allocation10_spill] sm:$0xff] %v2640_v32  ;;  %1873 = vpow2.f32 %v1240_v42  ;;  %v1246_v7 = vmul.f32 1.442695, %v1142_v61  ;;  %v1248_v49 = vmul.f32 1.442695, %v1143_v59  ;;  %v1080_v29 = vmul.f32 %v2400_v30, %v899_v33 }
 0x1e7   : > { %v2646_v6 = vpop.eup %1859  ;;  %1875 = vpow2.f32 %v1242_v36  ;;  %v1081_v4 = vmul.f32 %v2962_v25, %v899_v33  ;;  %v806_v18 = vadd.f32 1e-05, %v774_v16  ;;  %1322 = vadd.xlane.f32.xlu1 %v1321_v20  ;;  %v743_v19 = vmax.f32 %v711_v22, 0.0 }
 0x1e8   : > { %v2649_v40 = vpop.eup %1861  ;;  %1877 = vpow2.f32 %v1244_v48  ;;  %v1144_v23 = vsub.f32 10.0, %v1080_v29  ;;  %v712_v50 = vsub.f32 1.0, %v670_v31  ;;  %v713_v52 = vsub.f32 1.0, %v673_v62  ;;  %v685_v29 = vpop.xlane.xlu1 %684 }
 0x1e9   : > { %2963 = vst [vmem:[#allocation7_spill] sm:$0xff] %v2649_v40  ;;  %v2651_v39 = vpop.eup %1863  ;;  %1879 = vpow2.f32 %v1246_v7  ;;  %v1145_v30 = vsub.f32 10.0, %v1081_v4  ;;  %v838_v10 = vmul.f32 0.1, %v806_v18  ;;  %v775_v46 = vmul.f32 0.5, %v743_v19  ;;  %v682_v7 = vpop.xlane.xlu0 %681 }
 0x1ea   : > { %2964 = vst [vmem:[#allocation9_spill] sm:$0xff] %v2651_v39  ;;  %v2653_v42 = vpop.eup %1865  ;;  %1881 = vpow2.f32 %v1248_v49  ;;  %v1250_v36 = vmul.f32 1.442695, %v1144_v23  ;;  %v744_v61 = vmax.f32 %v712_v50, 0.0  ;;  %v745_v59 = vmax.f32 %v713_v52, 0.0 }
 0x1eb   : > { %2965 = vst [vmem:[#allocation11_spill] sm:$0xff] %v2653_v42  ;;  %v1252_v33 = vmul.f32 1.442695, %v1145_v30  ;;  %1883 = vrcp.f32 %v2618_v9  ;;  %v807_v16 = vadd.f32 1e-05, %v775_v46  ;;  %v1324_v31 = vadd.f32 %v2602_v53, %v2600_v55 }
 0x1ec   : > { %v2658_v62 = vpop.eup %1867  ;;  %1885 = vpow2.f32 %v1250_v36  ;;  %v776_v48 = vmul.f32 0.5, %v744_v61  ;;  %v777_v20 = vmul.f32 0.5, %v745_v59  ;;  %v714_v22 = vsub.f32 1.0, %v676_v3 }
 0x1ed   : > { %2966 = vst [vmem:[#allocation12_spill] sm:$0xff] %v2658_v62  ;;  %v2660_v25 = vpop.eup %1869  ;;  %1887 = vpow2.f32 %v1252_v33  ;;  %v839_v49 = vmul.f32 0.1, %v807_v16  ;;  %1325 = vadd.xlane.f32.xlu0 %v1324_v31  ;;  %v1327_v9 = vadd.f32 %v2606_v41, %v2604_v54  ;;  %v715_v4 = vsub.f32 1.0, %v679_v58 }
 0x1ee   : > { %2967 = vst [vmem:[#allocation13_spill] sm:$0xff] %v2660_v25  ;;  %1889 = vrcp.f32 %v2624_v14  ;;  %v808_v18 = vadd.f32 1e-05, %v776_v48  ;;  %v809_v19 = vadd.f32 1e-05, %v777_v20  ;;  %v746_v23 = vmax.f32 %v714_v22, 0.0 }
 0x1ef   : > { %v2665_v50 = vpop.eup %1871  ;;  %1891 = vrcp.f32 %v838_v10  ;;  %1328 = vadd.xlane.f32.xlu1 %v1327_v9  ;;  %v747_v3 = vmax.f32 %v715_v4, 0.0  ;;  %v716_v52 = vsub.f32 1.0, %v682_v7  ;;  %v717_v30 = vsub.f32 1.0, %v685_v29  ;;  %v2972_v10 = vld [vmem:[#allocation16_spill] sm:$0xff] }
 0x1f0   : > { %2968 = vst [vmem:[#allocation14_spill] sm:$0xff] %v2665_v50  ;;  %v2667_v46 = vpop.eup %1873  ;;  %1893 = vrcp.f32 %v839_v49  ;;  %v840_v36 = vmul.f32 0.1, %v808_v18  ;;  %v841_v61 = vmul.f32 0.1, %v809_v19  ;;  %v778_v59 = vmul.f32 0.5, %v746_v23 }
 0x1f1   : > { %2969 = vst [vmem:[#allocation15_spill] sm:$0xff] %v2667_v46  ;;  %v2669_v33 = vpop.eup %1875  ;;  %v779_v58 = vmul.f32 0.5, %v747_v3  ;;  %v748_v14 = vmax.f32 %v716_v52, 0.0  ;;  %v749_v16 = vmax.f32 %v717_v30, 0.0  ;;  %v1330_v31 = vadd.f32 %v2614_v17, %v2612_v11 }
 0x1f2   : > { %2970 = vst [vmem:[#allocation17_spill] sm:$0xff] %v2669_v33  ;;  %v2673_v48 = vpop.eup %1877  ;;  %v973_v20 = vsub.f32 1.0, %v2972_v10  ;;  %1895 = vrcp.f32 %v840_v36  ;;  %v810_v22 = vadd.f32 1e-05, %v778_v59  ;;  %v1333_v7 = vadd.f32 %v2630_v38, %v2628_v51 }
 0x1f3   : > { %2971 = vst [vmem:[#allocation28_spill] sm:$0xff] %v2673_v48  ;;  %v2678_v29 = vpop.eup %1879  ;;  %v811_v49 = vadd.f32 1e-05, %v779_v58  ;;  %v780_v9 = vmul.f32 0.5, %v748_v14  ;;  %v781_v4 = vmul.f32 0.5, %v749_v16  ;;  %1331 = vadd.xlane.f32.xlu0 %v1330_v31  ;;  %v1336_v18 = vadd.f32 %v2640_v32, %v2638_v8 }
 0x1f4   : > { %2973 = vst [vmem:[#allocation16_spill] sm:$0xff] %v2678_v29  ;;  %v2682_v19 = vpop.eup %1881  ;;  %v2975_v23 = vsub.f32 1.0, %v2959_v44  ;;  %1897 = vrcp.f32 %v841_v61  ;;  %v842_v52 = vmul.f32 0.1, %v810_v22  ;;  %1334 = vadd.xlane.f32.xlu1 %v1333_v7  ;;  %v1339_v30 = vadd.f32 %v2649_v40, %v2646_v6 }
 0x1f5   : > { %2974 = vst [vmem:[#allocation29_spill] sm:$0xff] %v2682_v19  ;;  %v1884_v36 = vpop.eup %1883  ;;  %v843_v59 = vmul.f32 0.1, %v811_v49  ;;  %v812_v58 = vadd.f32 1e-05, %v780_v9  ;;  %v2977_v31 = vsub.f32 1.0, %v2293_v15  ;;  %v1342_v49 = vadd.f32 %v2653_v42, %v2651_v39 }
 0x1f6   : > { %v2686_v3 = vmax.f32 %v2975_v23, 0.0  ;;  %v813_v14 = vadd.f32 1e-05, %v781_v4  ;;  %v2690_v16 = vpop.eup %1885  ;;  %v2696_v32 = vmax.f32 %v973_v20, 0.0  ;;  %v900_v44 = vmul.f32 0.5, %v1884_v36  ;;  %v2979_v23 = vld [vmem:[#allocation18_spill] sm:$0xff] }
 0x1f7   : > { %2976 = vst [vmem:[#allocation30_spill] sm:$0xff] %v2690_v16  ;;  %v2694_v10 = vmax.f32 %v2977_v31, 0.0  ;;  %1899 = vrcp.f32 %v842_v52  ;;  %v2698_v61 = vpop.eup %1887  ;;  %v844_v22 = vmul.f32 0.1, %v812_v58  ;;  %1337 = vadd.xlane.f32.xlu0 %v1336_v18  ;;  %v1345_v9 = vadd.f32 %v2660_v25, %v2658_v62  ;;  %v2980_v31 = vld [vmem:[#allocation19_spill] sm:$0xff] }
 0x1f8   : > { %2978 = vst [vmem:[#allocation31_spill] sm:$0xff] %v2698_v61  ;;  %v845_v7 = vmul.f32 0.1, %v813_v14  ;;  %v1890_v4 = vpop.eup %1889  ;;  %v1082_v15 = vmul.f32 %v2979_v23, %v900_v44  ;;  %v1083_v40 = vmul.f32 %v2980_v31, %v900_v44  ;;  %1340 = vadd.xlane.f32.xlu1 %v1339_v30  ;;  %v1348_v20 = vadd.f32 %v2667_v46, %v2665_v50  ;;  %v2981_v30 = vld [vmem:[#allocation20_spill] sm:$0xff]  ;;  %v2982_v46 = vld [vmem:[#allocation21_spill] sm:$0xff] }
 0x1f9   : > { %v1351_v52 = vadd.f32 %v2673_v48, %v2669_v33  ;;  %v1892_v36 = vpop.eup %1891  ;;  %v901_v18 = vmul.f32 0.5, %v1890_v4  ;;  %1901 = vrcp.f32 %v843_v59  ;;  %v1354_v58 = vadd.f32 %v2682_v19, %v2678_v29  ;;  %v2983_v33 = vld [vmem:[#allocation22_spill] sm:$0xff]  ;;  %v2984_v29 = vld [vmem:[#allocation23_spill] sm:$0xff] }
 0x1fa   : > { %v1357_v14 = vadd.f32 %v2698_v61, %v2690_v16  ;;  %v1894_v25 = vpop.eup %1893  ;;  %v1146_v23 = vsub.f32 10.0, %v1082_v15  ;;  %v1147_v62 = vsub.f32 10.0, %v1083_v40  ;;  %v902_v44 = vmul.f32 0.5, %v1892_v36  ;;  %v2985_v40 = vld [vmem:[#allocation2_spill] sm:$0xff] }
 0x1fb   : > { %1903 = vrcp.f32 %v844_v22  ;;  %v1084_v31 = vmul.f32 %v2981_v30, %v901_v18  ;;  %v1085_v50 = vmul.f32 %v2982_v46, %v901_v18  ;;  %v903_v42 = vmul.f32 0.5, %v1894_v25  ;;  %1343 = vadd.xlane.f32.xlu0 %v1342_v49  ;;  %v2986_v22 = vld [vmem:[#allocation24_spill] sm:$0xff] }
 0x1fc   : > { %1905 = vrcp.f32 %v845_v7  ;;  %v1896_v4 = vpop.eup %1895  ;;  %v1254_v59 = vmul.f32 1.442695, %v1146_v23  ;;  %v1256_v48 = vmul.f32 1.442695, %v1147_v62  ;;  %v1086_v19 = vmul.f32 %v2983_v33, %v902_v44  ;;  %1346 = vadd.xlane.f32.xlu1 %v1345_v9 }
 0x1fd   : > { %v1087_v39 = vmul.f32 %v2984_v29, %v902_v44  ;;  %v1148_v61 = vsub.f32 10.0, %v1084_v31  ;;  %v1149_v15 = vsub.f32 10.0, %v1085_v50  ;;  %v1088_v36 = vmul.f32 %v2985_v40, %v903_v42  ;;  %v2987_v44 = vld [vmem:[#allocation25_spill] sm:$0xff] }
 0x1fe   : > { %v1089_v16 = vmul.f32 %v2986_v22, %v903_v42  ;;  %v1898_v30 = vpop.eup %1897  ;;  %1907 = vpow2.f32 %v1254_v59  ;;  %v1150_v46 = vsub.f32 10.0, %v1086_v19  ;;  %v904_v7 = vmul.f32 0.5, %v1896_v4  ;;  %v2988_v42 = vld [vmem:[#allocation26_spill] sm:$0xff] }
 0x1ff   : > { %v1151_v25 = vsub.f32 10.0, %v1087_v39  ;;  %1909 = vpow2.f32 %v1256_v48  ;;  %v1258_v49 = vmul.f32 1.442695, %v1148_v61  ;;  %v1260_v18 = vmul.f32 1.442695, %v1149_v15  ;;  %1349 = vadd.xlane.f32.xlu0 %v1348_v20  ;;  %v2989_v20 = vld [vmem:[#allocation27_spill] sm:$0xff] }
 0x200   : > { %v1152_v62 = vsub.f32 10.0, %v1088_v36  ;;  %v1262_v23 = vmul.f32 1.442695, %v1150_v46  ;;  %v1153_v9 = vsub.f32 10.0, %v1089_v16  ;;  %v1090_v50 = vmul.f32 %v2987_v44, %v904_v7  ;;  %1352 = vadd.xlane.f32.xlu1 %v1351_v52  ;;  %v2990_v36 = vld [vmem:[#allocation4_spill] sm:$0xff]  ;;  %v2991_v46 = vld [vmem:[#allocation3_spill] sm:$0xff] }
 0x201   : > { %v1900_v33 = vpop.eup %1899  ;;  %v1264_v29 = vmul.f32 1.442695, %v1151_v25  ;;  %1911 = vpow2.f32 %v1258_v49  ;;  %v1091_v40 = vmul.f32 %v2988_v42, %v904_v7  ;;  %v905_v59 = vmul.f32 0.5, %v1898_v30  ;;  %v2992_v49 = vld [vmem:[#allocation5_spill] sm:$0xff] }
 0x202   : > { %v1266_v31 = vmul.f32 1.442695, %v1152_v62  ;;  %1913 = vpow2.f32 %v1260_v18  ;;  %v1268_v39 = vmul.f32 1.442695, %v1153_v9  ;;  %v1154_v19 = vsub.f32 10.0, %v1090_v50 }
 0x203   : > { %v906_v48 = vmul.f32 0.5, %v1900_v33  ;;  %v1902_v61 = vpop.eup %1901  ;;  %1915 = vpow2.f32 %v1262_v23  ;;  %v1155_v4 = vsub.f32 10.0, %v1091_v40  ;;  %v1092_v15 = vmul.f32 %v2989_v20, %v905_v59  ;;  %1355 = vadd.xlane.f32.xlu0 %v1354_v58 }
 0x204   : > { %v1093_v22 = vmul.f32 %v2990_v36, %v905_v59  ;;  %1917 = vpow2.f32 %v1264_v29  ;;  %v1270_v52 = vmul.f32 1.442695, %v1154_v19  ;;  %1358 = vadd.xlane.f32.xlu1 %v1357_v14  ;;  %v907_v44 = vmul.f32 0.5, %v1902_v61  ;;  %v2993_v19 = vld [vmem:[#allocation6_spill] sm:$0xff] }
 0x205   : > { %v1904_v16 = vpop.eup %1903  ;;  %v1094_v25 = vmul.f32 %v2991_v46, %v906_v48  ;;  %v1095_v7 = vmul.f32 %v2992_v49, %v906_v48  ;;  %1919 = vpow2.f32 %v1266_v31  ;;  %v1272_v18 = vmul.f32 1.442695, %v1155_v4  ;;  %v2994_v31 = vld [vmem:[#allocation8_spill] sm:$0xff] }
 0x206   : > { %v1906_v30 = vpop.eup %1905  ;;  %v1156_v62 = vsub.f32 10.0, %v1092_v15  ;;  %v1157_v33 = vsub.f32 10.0, %v1093_v22  ;;  %1921 = vpow2.f32 %v1268_v39  ;;  %v908_v42 = vmul.f32 0.5, %v1904_v16 }
 0x207   : > { %v1158_v23 = vsub.f32 10.0, %v1094_v25  ;;  %v1159_v9 = vsub.f32 10.0, %v1095_v7  ;;  %1923 = vpow2.f32 %v1270_v52  ;;  %v1096_v14 = vmul.f32 %v2993_v19, %v907_v44 }
 0x208   : > { %v1274_v50 = vmul.f32 1.442695, %v1156_v62  ;;  %v1276_v58 = vmul.f32 1.442695, %v1157_v33  ;;  %v2726_v29 = vpop.eup %1907  ;;  %1925 = vpow2.f32 %v1272_v18  ;;  %v1097_v4 = vmul.f32 %v2994_v31, %v907_v44 }
 0x209   : > { %v1278_v40 = vmul.f32 1.442695, %v1158_v23  ;;  %v1280_v59 = vmul.f32 1.442695, %v1159_v9  ;;  %v2729_v48 = vpop.eup %1909  ;;  %v1098_v39 = vmul.f32 %v2510_v28, %v908_v42  ;;  %v1099_v61 = vmul.f32 %v2686_v3, %v908_v42 }
 0x20a   : > { %1927 = vpow2.f32 %v1274_v50  ;;  %v1160_v20 = vsub.f32 10.0, %v1096_v14  ;;  %v909_v15 = vmul.f32 0.5, %v1906_v30  ;;  %v1360_v36 = vadd.f32 %v2729_v48, %v2726_v29 }
 0x20b   : > { %1929 = vpow2.f32 %v1276_v58  ;;  %v2736_v22 = vpop.eup %1911  ;;  %v1161_v16 = vsub.f32 10.0, %v1097_v4  ;;  %v1162_v52 = vsub.f32 10.0, %v1098_v39  ;;  %v1163_v46 = vsub.f32 10.0, %v1099_v61 }
 0x20c   : > { %1931 = vpow2.f32 %v1278_v40  ;;  %v2738_v25 = vpop.eup %1913  ;;  %v1282_v49 = vmul.f32 1.442695, %v1160_v20  ;;  %v1100_v28 = vmul.f32 %v2694_v10, %v909_v15  ;;  %v1101_v3 = vmul.f32 %v2696_v32, %v909_v15  ;;  %1361 = vadd.xlane.f32.xlu0 %v1360_v36 }
 0x20d   : > { %1933 = vpow2.f32 %v1280_v59  ;;  %v2742_v7 = vpop.eup %1915  ;;  %v1284_v30 = vmul.f32 1.442695, %v1161_v16  ;;  %v1286_v18 = vmul.f32 1.442695, %v1162_v52  ;;  %v1288_v62 = vmul.f32 1.442695, %v1163_v46 }
 0x20e   : > { %v1363_v33 = vadd.f32 %v2738_v25, %v2736_v22  ;;  %v2746_v23 = vpop.eup %1917  ;;  %1935 = vpow2.f32 %v1282_v49  ;;  %v1164_v9 = vsub.f32 10.0, %v1100_v28  ;;  %v1165_v44 = vsub.f32 10.0, %v1101_v3 }
 0x20f   : > { %v2748_v50 = vpop.eup %1919  ;;  %1937 = vpow2.f32 %v1284_v30  ;;  %v1366_v32 = vadd.f32 %v2746_v23, %v2742_v7 }
 0x210   : > { %1364 = vadd.xlane.f32.xlu1 %v1363_v33  ;;  %v2752_v10 = vpop.eup %1921  ;;  %1939 = vpow2.f32 %v1286_v18  ;;  %v1290_v58 = vmul.f32 1.442695, %v1164_v9  ;;  %v1292_v42 = vmul.f32 1.442695, %v1165_v44 }
 0x211   : > { %v2754_v40 = vpop.eup %1923  ;;  %1941 = vpow2.f32 %v1288_v62  ;;  %1367 = vadd.xlane.f32.xlu0 %v1366_v32  ;;  %v1369_v59 = vadd.f32 %v2752_v10, %v2748_v50 }
 0x212   : > { %v2758_v19 = vpop.eup %1925  ;;  %1943 = vpow2.f32 %v1290_v58 }
 0x213   : > { %1945 = vpow2.f32 %v1292_v42  ;;  %v1372_v31 = vadd.f32 %v2758_v19, %v2754_v40 }
 0x214   : > { %v2760_v14 = vpop.eup %1927  ;;  %1370 = vadd.xlane.f32.xlu1 %v1369_v59 }
 0x215   : > { %v2764_v4 = vpop.eup %1929  ;;  %1373 = vadd.xlane.f32.xlu0 %v1372_v31 }
 0x216   : > { %v2766_v39 = vpop.eup %1931  ;;  %v1375_v61 = vadd.f32 %v2764_v4, %v2760_v14 }
 0x217   : > { %v2770_v20 = vpop.eup %1933 }
 0x218   : > { %1376 = vadd.xlane.f32.xlu1 %v1375_v61  ;;  %v1378_v15 = vadd.f32 %v2770_v20, %v2766_v39  ;;  %v2774_v36 = vpop.eup %1935 }
 0x219   : > { %v2776_v16 = vpop.eup %1937 }
 0x21a   : > { %2995 = vst [vmem:[#allocation18_spill] sm:$0xff] %v2776_v16  ;;  %1379 = vadd.xlane.f32.xlu0 %v1378_v15  ;;  %v2778_v52 = vpop.eup %1939  ;;  %v1381_v46 = vadd.f32 %v2776_v16, %v2774_v36 }
 0x21b   : > { %2996 = vst [vmem:[#allocation19_spill] sm:$0xff] %v2778_v52  ;;  %v2782_v49 = vpop.eup %1941 }
 0x21c   : > { %2997 = vst [vmem:[#allocation20_spill] sm:$0xff] %v2782_v49  ;;  %v2784_v28 = vpop.eup %1943  ;;  %1382 = vadd.xlane.f32.xlu1 %v1381_v46  ;;  %v1384_v3 = vadd.f32 %v2782_v49, %v2778_v52 }
 0x21d   : > { %2998 = vst [vmem:[#allocation21_spill] sm:$0xff] %v2784_v28  ;;  %v2788_v30 = vpop.eup %1945 }
 0x21e   : > { %2999 = vst [vmem:[#allocation22_spill] sm:$0xff] %v2788_v30  ;;  %1385 = vadd.xlane.f32.xlu0 %v1384_v3  ;;  %v1387_v18 = vadd.f32 %v2788_v30, %v2784_v28 }
 0x220   : > { %1388 = vadd.xlane.f32.xlu1 %v1387_v18 }
 0x23a   : > { %v1296_v62 = vpop.xlane.xlu0 %1295 }
 0x23b   : > { %v1299_v33 = vpop.xlane.xlu1 %1298 }
 0x23c   : > { %1947 = vrcp.f32 %v1299_v33 }
 0x23d   : > { %1949 = vrcp.f32 %v1296_v62 }
 0x240   : > { %v1302_v9 = vpop.xlane.xlu0 %1301 }
 0x241   : > { %1951 = vrcp.f32 %v1302_v9 }
 0x246   : > { %v1948_v59 = vpop.eup %1947 }
 0x247   : > { %v1950_v31 = vpop.eup %1949  ;;  %v1424_v15 = vmul.f32 %v1948_v59, %v2525_v60  ;;  %v1425_v18 = vmul.f32 %v1948_v59, %v2527_v34 }
 0x248   : > { %v1422_v62 = vmul.f32 %v1950_v31, %v2519_v63 }
 0x249   : > { %v1305_v44 = vpop.xlane.xlu1 %1304 }
 0x24a   : > { %1953 = vrcp.f32 %v1305_v44 }
 0x24b   : > { %v1952_v61 = vpop.eup %1951 }
 0x24c   : > { %v1308_v32 = vpop.xlane.xlu0 %1307  ;;  %v1426_v33 = vmul.f32 %v1952_v61, %v2533_v57  ;;  %v1427_v30 = vmul.f32 %v1952_v61, %v2536_v37 }
 0x24d   : > { %1955 = vrcp.f32 %v1308_v32  ;;  %v1311_v58 = vpop.xlane.xlu1 %1310  ;;  %v1423_v32 = vmul.f32 %v1950_v31, %v2521_v35 }
 0x24e   : > { %1957 = vrcp.f32 %v1311_v58  ;;  %v1486_v58 = vmax.f32 %v1422_v62, %v1424_v15 }
 0x24f   : > { %v1487_v28 = vmax.f32 %v1423_v32, %v1425_v18 }
 0x250   : > { %v1488_v49 = vmax.f32 %v1486_v58, %v1426_v33 }
 0x251   : > { %v1489_v59 = vmax.f32 %v1487_v28, %v1427_v30 }
 0x252   : > { %v1314_v42 = vpop.xlane.xlu0 %1313 }
 0x253   : > { %1959 = vrcp.f32 %v1314_v42 }
 0x254   : > { %v1954_v3 = vpop.eup %1953 }
 0x255   : > { %v1428_v42 = vmul.f32 %v1954_v3, %v2546_v27  ;;  %v1429_v60 = vmul.f32 %v1954_v3, %v2552_v12 }
 0x257   : > { %v1956_v44 = vpop.eup %1955  ;;  %v1490_v52 = vmax.f32 %v1488_v49, %v1428_v42  ;;  %v1491_v35 = vmax.f32 %v1489_v59, %v1429_v60 }
 0x258   : > { %v1430_v34 = vmul.f32 %v1956_v44, %v2554_v21  ;;  %v1958_v63 = vpop.eup %1957  ;;  %v1431_v57 = vmul.f32 %v1956_v44, %v2558_v24 }
 0x259   : > { %v1432_v61 = vmul.f32 %v1958_v63, %v2562_v47  ;;  %v1433_v15 = vmul.f32 %v1958_v63, %v2564_v45 }
 0x25a   : > { %v1492_v37 = vmax.f32 %v1490_v52, %v1430_v34  ;;  %v1493_v27 = vmax.f32 %v1491_v35, %v1431_v57 }
 0x25c   : > { %v1317_v46 = vpop.xlane.xlu1 %1316  ;;  %v1494_v3 = vmax.f32 %v1492_v37, %v1432_v61  ;;  %v1495_v30 = vmax.f32 %v1493_v27, %v1433_v15 }
 0x25d   : > { %1961 = vrcp.f32 %v1317_v46  ;;  %v1960_v16 = vpop.eup %1959 }
 0x25e   : > { %v1434_v12 = vmul.f32 %v1960_v16, %v2574_v56  ;;  %v1435_v21 = vmul.f32 %v1960_v16, %v2576_v26 }
 0x260   : > { %v1496_v49 = vmax.f32 %v1494_v3, %v1434_v12  ;;  %v1497_v52 = vmax.f32 %v1495_v30, %v1435_v21 }
 0x263   : > { %v1320_v9 = vpop.xlane.xlu0 %1319 }
 0x264   : > { %1963 = vrcp.f32 %v1320_v9 }
 0x267   : > { %v1962_v46 = vpop.eup %1961 }
 0x268   : > { %v1436_v18 = vmul.f32 %v1962_v46, %v2582_v1  ;;  %v1437_v47 = vmul.f32 %v1962_v46, %v2584_v2 }
 0x26a   : > { %v1498_v9 = vmax.f32 %v1496_v49, %v1436_v18  ;;  %v1499_v26 = vmax.f32 %v1497_v52, %v1437_v47 }
 0x26e   : > { %v1964_v28 = vpop.eup %1963 }
 0x26f   : > { %v1438_v33 = vmul.f32 %v1964_v28, %v2587_v13  ;;  %v1439_v45 = vmul.f32 %v1964_v28, %v2590_v5 }
 0x271   : > { %v1500_v44 = vmax.f32 %v1498_v9, %v1438_v33  ;;  %v1501_v1 = vmax.f32 %v1499_v26, %v1439_v45  ;;  %v3001_v45 = vld [vmem:[#allocation7_spill] sm:$0xff] }
 0x274   : > { %v1323_v31 = vpop.xlane.xlu1 %1322 }
 0x275   : > { %1965 = vrcp.f32 %v1323_v31 }
 0x27a   : > { %v1326_v24 = vpop.xlane.xlu0 %1325 }
 0x27b   : > { %1967 = vrcp.f32 %v1326_v24 }
 0x27c   : > { %v1329_v62 = vpop.xlane.xlu1 %1328 }
 0x27d   : > { %1969 = vrcp.f32 %v1329_v62  ;;  %v3000_v62 = vld [vmem:[#allocation10_spill] sm:$0xff] }
 0x27f   : > { %v1966_v56 = vpop.eup %1965 }
 0x280   : > { %v1332_v16 = vpop.xlane.xlu0 %1331  ;;  %v1440_v32 = vmul.f32 %v1966_v56, %v2592_v43  ;;  %v1441_v42 = vmul.f32 %v1966_v56, %v2594_v0 }
 0x281   : > { %1971 = vrcp.f32 %v1332_v16  ;;  %v1335_v58 = vpop.xlane.xlu1 %1334 }
 0x282   : > { %1973 = vrcp.f32 %v1335_v58  ;;  %v1502_v34 = vmax.f32 %v1500_v44, %v1440_v32  ;;  %v1503_v63 = vmax.f32 %v1501_v1, %v1441_v42  ;;  %v3002_v58 = vld [vmem:[#allocation9_spill] sm:$0xff]  ;;  %v3003_v42 = vld [vmem:[#allocation11_spill] sm:$0xff] }
 0x284   : > { %v1338_v2 = vpop.xlane.xlu0 %1337 }
 0x285   : > { %v1968_v60 = vpop.eup %1967  ;;  %1975 = vrcp.f32 %v1338_v2  ;;  %v1341_v13 = vpop.xlane.xlu1 %1340  ;;  %v3004_v2 = vld [vmem:[#allocation12_spill] sm:$0xff] }
 0x286   : > { %v1442_v5 = vmul.f32 %v1968_v60, %v2600_v55  ;;  %v1443_v59 = vmul.f32 %v1968_v60, %v2602_v53  ;;  %1977 = vrcp.f32 %v1341_v13 }
 0x287   : > { %v1970_v57 = vpop.eup %1969 }
 0x288   : > { %v1504_v35 = vmax.f32 %v1502_v34, %v1442_v5  ;;  %v1505_v43 = vmax.f32 %v1503_v63, %v1443_v59  ;;  %v1444_v31 = vmul.f32 %v1970_v57, %v2604_v54  ;;  %v1445_v37 = vmul.f32 %v1970_v57, %v2606_v41  ;;  %v1344_v0 = vpop.xlane.xlu0 %1343  ;;  %v3005_v34 = vld [vmem:[#allocation13_spill] sm:$0xff] }
 0x289   : > { %1979 = vrcp.f32 %v1344_v0  ;;  %v1347_v61 = vpop.xlane.xlu1 %1346 }
 0x28a   : > { %1981 = vrcp.f32 %v1347_v61  ;;  %v1506_v12 = vmax.f32 %v1504_v35, %v1444_v31  ;;  %v1507_v46 = vmax.f32 %v1505_v43, %v1445_v37  ;;  %v3006_v43 = vld [vmem:[#allocation14_spill] sm:$0xff]  ;;  %v3007_v37 = vld [vmem:[#allocation15_spill] sm:$0xff]  ;;  %v3008_v61 = vld [vmem:[#allocation17_spill] sm:$0xff] }
 0x28b   : > { %v1972_v27 = vpop.eup %1971 }
 0x28c   : > { %v1974_v15 = vpop.eup %1973  ;;  %v1446_v55 = vmul.f32 %v1972_v27, %v2612_v11  ;;  %v1447_v53 = vmul.f32 %v1972_v27, %v2614_v17  ;;  %v1350_v21 = vpop.xlane.xlu0 %1349 }
 0x28d   : > { %v1448_v3 = vmul.f32 %v1974_v15, %v2628_v51  ;;  %v1449_v28 = vmul.f32 %v1974_v15, %v2630_v38  ;;  %1983 = vrcp.f32 %v1350_v21  ;;  %v1353_v54 = vpop.xlane.xlu1 %1352  ;;  %v3009_v15 = vld [vmem:[#allocation28_spill] sm:$0xff] }
 0x28e   : > { %v1508_v41 = vmax.f32 %v1506_v12, %v1446_v55  ;;  %v1509_v30 = vmax.f32 %v1507_v46, %v1447_v53  ;;  %1985 = vrcp.f32 %v1353_v54 }
 0x28f   : > { %v1976_v24 = vpop.eup %1975 }
 0x290   : > { %v1978_v49 = vpop.eup %1977  ;;  %v1510_v18 = vmax.f32 %v1508_v41, %v1448_v3  ;;  %v1511_v52 = vmax.f32 %v1509_v30, %v1449_v28  ;;  %v1450_v47 = vmul.f32 %v1976_v24, %v2638_v8  ;;  %v1451_v11 = vmul.f32 %v1976_v24, %v3000_v62  ;;  %v1356_v33 = vpop.xlane.xlu0 %1355  ;;  %v3010_v41 = vld [vmem:[#allocation16_spill] sm:$0xff]  ;;  %v3011_v24 = vld [vmem:[#allocation29_spill] sm:$0xff] }
 0x291   : > { %v1452_v17 = vmul.f32 %v1978_v49, %v2646_v6  ;;  %v1453_v51 = vmul.f32 %v1978_v49, %v3001_v45  ;;  %1987 = vrcp.f32 %v1356_v33  ;;  %v1359_v38 = vpop.xlane.xlu1 %1358 }
 0x292   : > { %v1512_v56 = vmax.f32 %v1510_v18, %v1450_v47  ;;  %v1513_v9 = vmax.f32 %v1511_v52, %v1451_v11  ;;  %1989 = vrcp.f32 %v1359_v38  ;;  %v3012_v52 = vld [vmem:[#allocation30_spill] sm:$0xff] }
 0x293   : > { %v1980_v26 = vpop.eup %1979 }
 0x294   : > { %v1982_v16 = vpop.eup %1981  ;;  %v1514_v44 = vmax.f32 %v1512_v56, %v1452_v17  ;;  %v1515_v32 = vmax.f32 %v1513_v9, %v1453_v51  ;;  %v1454_v1 = vmul.f32 %v1980_v26, %v3002_v58  ;;  %v1455_v8 = vmul.f32 %v1980_v26, %v3003_v42  ;;  %v3013_v17 = vld [vmem:[#allocation31_spill] sm:$0xff] }
 0x295   : > { %v1456_v60 = vmul.f32 %v1982_v16, %v3004_v2  ;;  %v1457_v13 = vmul.f32 %v1982_v16, %v3005_v34 }
 0x296   : > { %v1516_v6 = vmax.f32 %v1514_v44, %v1454_v1  ;;  %v1517_v63 = vmax.f32 %v1515_v32, %v1455_v8 }
 0x297   : > { %v1984_v5 = vpop.eup %1983 }
 0x298   : > { %v1986_v59 = vpop.eup %1985  ;;  %v1518_v57 = vmax.f32 %v1516_v6, %v1456_v60  ;;  %v1519_v35 = vmax.f32 %v1517_v63, %v1457_v13  ;;  %v1458_v31 = vmul.f32 %v1984_v5, %v3006_v43  ;;  %v1459_v0 = vmul.f32 %v1984_v5, %v3007_v37 }
 0x299   : > { %v1460_v27 = vmul.f32 %v1986_v59, %v3008_v61  ;;  %v1461_v12 = vmul.f32 %v1986_v59, %v3009_v15  ;;  %v1362_v46 = vpop.xlane.xlu0 %1361 }
 0x29a   : > { %v1520_v55 = vmax.f32 %v1518_v57, %v1458_v31  ;;  %v1521_v53 = vmax.f32 %v1519_v35, %v1459_v0  ;;  %1991 = vrcp.f32 %v1362_v46 }
 0x29b   : > { %v1988_v21 = vpop.eup %1987 }
 0x29c   : > { %v1990_v3 = vpop.eup %1989  ;;  %v1522_v28 = vmax.f32 %v1520_v55, %v1460_v27  ;;  %v1523_v54 = vmax.f32 %v1521_v53, %v1461_v12  ;;  %v1462_v30 = vmul.f32 %v1988_v21, %v3010_v41  ;;  %v1463_v49 = vmul.f32 %v1988_v21, %v3011_v24 }
 0x29d   : > { %v1365_v18 = vpop.xlane.xlu1 %1364  ;;  %v1464_v47 = vmul.f32 %v1990_v3, %v3012_v52  ;;  %v1465_v45 = vmul.f32 %v1990_v3, %v3013_v17 }
 0x29e   : > { %1993 = vrcp.f32 %v1365_v18  ;;  %v1368_v62 = vpop.xlane.xlu0 %1367  ;;  %v1524_v11 = vmax.f32 %v1522_v28, %v1462_v30  ;;  %v1525_v33 = vmax.f32 %v1523_v54, %v1463_v49  ;;  %v3014_v54 = vld [vmem:[#allocation18_spill] sm:$0xff]  ;;  %v3015_v49 = vld [vmem:[#allocation19_spill] sm:$0xff]  ;;  %v3016_v18 = vld [vmem:[#allocation20_spill] sm:$0xff] }
 0x29f   : > { %1995 = vrcp.f32 %v1368_v62 }
 0x2a0   : > { %v1526_v56 = vmax.f32 %v1524_v11, %v1464_v47  ;;  %v1527_v9 = vmax.f32 %v1525_v33, %v1465_v45  ;;  %v3017_v11 = vld [vmem:[#allocation21_spill] sm:$0xff]  ;;  %v3018_v33 = vld [vmem:[#allocation22_spill] sm:$0xff] }
 0x2a1   : > { %v1371_v51 = vpop.xlane.xlu1 %1370 }
 0x2a2   : > { %1997 = vrcp.f32 %v1371_v51  ;;  %v1374_v38 = vpop.xlane.xlu0 %1373 }
 0x2a3   : > { %1999 = vrcp.f32 %v1374_v38 }
 0x2a4   : > { %v1992_v26 = vpop.eup %1991 }
 0x2a5   : > { %v1377_v16 = vpop.xlane.xlu1 %1376  ;;  %v1466_v44 = vmul.f32 %v1992_v26, %v2726_v29  ;;  %v1467_v32 = vmul.f32 %v1992_v26, %v2729_v48 }
 0x2a6   : > { %2001 = vrcp.f32 %v1377_v16 }
 0x2a7   : > { %v1380_v58 = vpop.xlane.xlu0 %1379  ;;  %v1528_v42 = vmax.f32 %v1526_v56, %v1466_v44  ;;  %v1529_v8 = vmax.f32 %v1527_v9, %v1467_v32 }
 0x2a8   : > { %v1994_v1 = vpop.eup %1993  ;;  %2003 = vrcp.f32 %v1380_v58 }
 0x2a9   : > { %v1468_v2 = vmul.f32 %v1994_v1, %v2736_v22  ;;  %v1469_v60 = vmul.f32 %v1994_v1, %v2738_v25  ;;  %v1996_v34 = vpop.eup %1995  ;;  %v1383_v13 = vpop.xlane.xlu1 %1382 }
 0x2aa   : > { %v1470_v5 = vmul.f32 %v1996_v34, %v2742_v7  ;;  %v1471_v29 = vmul.f32 %v1996_v34, %v2746_v23  ;;  %2005 = vrcp.f32 %v1383_v13 }
 0x2ab   : > { %v1530_v6 = vmax.f32 %v1528_v42, %v1468_v2  ;;  %v1531_v63 = vmax.f32 %v1529_v8, %v1469_v60  ;;  %v1386_v48 = vpop.xlane.xlu0 %1385 }
 0x2ac   : > { %v1998_v59 = vpop.eup %1997  ;;  %2007 = vrcp.f32 %v1386_v48 }
 0x2ad   : > { %v1532_v57 = vmax.f32 %v1530_v6, %v1470_v5  ;;  %v1533_v35 = vmax.f32 %v1531_v63, %v1471_v29  ;;  %v1472_v43 = vmul.f32 %v1998_v59, %v2748_v50  ;;  %v1473_v31 = vmul.f32 %v1998_v59, %v2752_v10  ;;  %v2000_v22 = vpop.eup %1999  ;;  %v1389_v25 = vpop.xlane.xlu1 %1388 }
 0x2ae   : > { %v1474_v61 = vmul.f32 %v2000_v22, %v2754_v40  ;;  %v1475_v7 = vmul.f32 %v2000_v22, %v2758_v19  ;;  %2009 = vrcp.f32 %v1389_v25 }
 0x2af   : > { %v1534_v37 = vmax.f32 %v1532_v57, %v1472_v43  ;;  %v1535_v0 = vmax.f32 %v1533_v35, %v1473_v31 }
 0x2b0   : > { %v2002_v27 = vpop.eup %2001 }
 0x2b1   : > { %v1536_v23 = vmax.f32 %v1534_v37, %v1474_v61  ;;  %v1537_v15 = vmax.f32 %v1535_v0, %v1475_v7  ;;  %v1476_v12 = vmul.f32 %v2002_v27, %v2760_v14  ;;  %v1477_v46 = vmul.f32 %v2002_v27, %v2764_v4 }
 0x2b2   : > { %v2004_v50 = vpop.eup %2003 }
 0x2b3   : > { %v1538_v10 = vmax.f32 %v1536_v23, %v1476_v12  ;;  %v1539_v55 = vmax.f32 %v1537_v15, %v1477_v46  ;;  %v1478_v53 = vmul.f32 %v2004_v50, %v2766_v39  ;;  %v1479_v21 = vmul.f32 %v2004_v50, %v2770_v20 }
 0x2b4   : > { %v2006_v28 = vpop.eup %2005 }
 0x2b5   : > { %v1540_v3 = vmax.f32 %v1538_v10, %v1478_v53  ;;  %v1541_v40 = vmax.f32 %v1539_v55, %v1479_v21  ;;  %v1480_v19 = vmul.f32 %v2006_v28, %v2774_v36  ;;  %v1481_v41 = vmul.f32 %v2006_v28, %v3014_v54 }
 0x2b6   : > { %v2008_v30 = vpop.eup %2007 }
 0x2b7   : > { %v1542_v24 = vmax.f32 %v1540_v3, %v1480_v19  ;;  %v1543_v14 = vmax.f32 %v1541_v40, %v1481_v41  ;;  %v1482_v4 = vmul.f32 %v2008_v30, %v3015_v49  ;;  %v1483_v52 = vmul.f32 %v2008_v30, %v3016_v18 }
 0x2b8   : > { %v2010_v47 = vpop.eup %2009 }
 0x2b9   : > { %v1544_v62 = vmax.f32 %v1542_v24, %v1482_v4  ;;  %v1545_v39 = vmax.f32 %v1543_v14, %v1483_v52  ;;  %v1484_v20 = vmul.f32 %v2010_v47, %v3017_v11  ;;  %v1485_v17 = vmul.f32 %v2010_v47, %v3018_v33 }
 0x2bb   : > { %v1546_v45 = vmax.f32 %v1544_v62, %v1484_v20  ;;  %v1547_v51 = vmax.f32 %v1545_v39, %v1485_v17 }
 0x2bd   : > { %1552 = vst [vmem:[%s215_s24] sm:$0xff] %v1546_v45  ;;  %1553 = vst [vmem:[%s215_s24 + $0x8] sm:$0xff] %v1547_v51 }
 0x2be PF: > { %s12_s11 = sadd.s32 1, %s2033_s11   ;;  %s3019_s9 = smov %s2029_s10 }
 0x2bf   : > { %p9_p5 = scmp.ge.s32.totalorder %s12_s11, 4   ;;  %s3020_s10 = smov %s3022_s12 }
 0x2c1   :  { %11 = sbr.rel (!%p9_p5) target bundleno = 2 (0x2), region = 65 }

// kernel: contextual_loss.3
= control target key start
LH: loop header
LB: loop body
LE: loop exit
PB: predicated region body
PF: predicated region fallthrough
CT: control target
= control target key end

     0   :  { %s764_s9 = smov 0   ;;  %s766_s10 = smov 0   ;;  %s875_s0 = inlined_call_operand.vmem [shape: bf16[2,64,16], index: 0, kind: input, shape index: {}]   ;;  %s876_s1 = inlined_call_operand.vmem [shape: bf16[2,16,128], index: 1, kind: input, shape index: {}]   ;;  %s877_s2 = inlined_call_operand.vmem [shape: f32[2,1,8,128], index: 2, kind: output, shape index: {}]  }
   0x1   :  { %s768_s11 = smov 0  }
   0x2 LB: > { %s31_s12 = sadd.s32 1, %s743_s10  ;;  %p611_p0 = scmp.ge.s32.totalorder %s747_s11, 1  ;;  %s747_s11 = sphi %s768_s11, %s12_s11   ;;  %s743_s10 = sphi %s766_s10, %s879_s10   ;;  %s739_s9 = sphi %s764_s9, %s878_s9  }
   0x3   : > { %p33_p1 = scmp.ge.s32.totalorder %s31_s12, 2  ;;  %p154_p2 = scmp.lt.s32.totalorder %s747_s11, 3 }
   0x5   : > { %s881_s12 = smov (%p33_p1, %s31_s12), 0  ;;  %p155_p3 = pnand %p611_p0, %p154_p2 }
   0x6   : > { %p190_p4 = scmp.lt.s32.totalorder (!%p155_p3), %s739_s9, 1  ;;  %vm254_vm0 = vcmask (!%p155_p3), 130048   ;;  %v332_v5 = vlaneseq (!%p155_p3) }
   0x7   : > { %158 = sbr.rel (%p155_p3) target bundleno = 593 (0x251), region = 28 }
   0x8   : > { %v794_v6 = vand.u32 (!%p155_p3), 127, %v332_v5 }
   0xa   : > { %vm334_vm1 = vcmp.lt.s32.totalorder (!%p155_p3), %v794_v6, 64 }
   0xe   : > { %s883_s9 = smov (!%p190_p4, %s739_s9), 1 }
   0xf   : > { %s628_s13 = sshll.u32 %s883_s9, 5  ;;  %s629_s14 = sshll.u32 %s883_s9, 3 }
  0x10   : > { %s197_s17 = scalar_lea.vmem %s875_s0, %s628_s13  ;;  %s204_s20 = scalar_lea.vmem %s876_s1, %s629_s14 }
  0x11   : > { %v672_v0 = vld [vmem:[%s204_s20] sm:$0xff]   ;;  %v674_v2 = vld [vmem:[%s197_s17 + $0x8] sm:$0xff]   ;;  %v675_v3 = vld [vmem:[%s197_s17 + $0x10] sm:$0xff]   ;;  %s211_s23 = scalar_lea.vmem %s877_s2, %s629_s14 }
  0x12   : > { %v673_v1 = vld [vmem:[%s197_s17] sm:$0xff]   ;;  %635 = vmatprep.subr.bf16.mxu0 %v672_v0  ;;  %645 = vmatprep.subr.bf16.mxu1 %v672_v0  ;;  %v676_v4 = vld [vmem:[%s197_s17 + $0x18] sm:$0xff]  }
  0x13   : > { %636 = vmatpush3.bf16.msra.mxu0 %v672_v0  ;;  %637 = vmatprep.mubr.msk.bf16.mxu0 %vm254_vm0, %v673_v1 }
  0x14   : > { %646 = vmatpush3.bf16.msra.mxu1 %v672_v0  ;;  %641 = vmatprep.mubr.msk.bf16.mxu1 %vm254_vm0, %v675_v3 }
  0x16   : > { %638 = vmatmul.mubr.msk.bf16.vlgmr.msra.gmra.mrb[0].mxu0 %vm254_vm0, %v674_v2 }
  0x17   : > { %642 = vmatmul.mubr.msk.bf16.vlgmr.msra.gmra.mrb[0].mxu1 %vm254_vm0, %v676_v4 }
  0xe9   : > { %v797_v7 = vpop.f32.mrb[0].mxu0 }
  0xea   : > { %v799_v8 = vpop.f32.mrb[1].mxu0  ;;  %v339_v9 = vsel %vm334_vm1, %v797_v7, -inf  ;;  %v804_v10 = vpop.f32.mrb[0].mxu1  ;;  %v419_v1 = vsub.f32 1.0, %v797_v7 }
  0xeb   : > { %349 = vmax.xlane.f32.xlu1 %v339_v9  ;;  %v806_v11 = vpop.f32.mrb[2].mxu0  ;;  %v337_v12 = vsel %vm334_vm1, %v799_v8, -inf  ;;  %v811_v13 = vpop.f32.mrb[1].mxu1  ;;  %v343_v22 = vsel %vm334_vm1, %v804_v10, -inf  ;;  %v417_v4 = vsub.f32 1.0, %v799_v8 }
  0xec   : > { %345 = vmax.xlane.f32.xlu0 %v337_v12  ;;  %v813_v14 = vpop.f32.mrb[3].mxu0  ;;  %v815_v15 = vpop.f32.mrb[2].mxu1  ;;  %v340_v17 = vsel %vm334_vm1, %v806_v11, -inf  ;;  %v341_v20 = vsel %vm334_vm1, %v811_v13, -inf }
  0xed   : > { %v817_v16 = vpop.f32.mrb[3].mxu1  ;;  %v338_v18 = vsel %vm334_vm1, %v813_v14, -inf  ;;  %v344_v21 = vsel %vm334_vm1, %v815_v15, -inf }
  0xee   : > { %v342_v19 = vsel %vm334_vm1, %v817_v16, -inf }
  0xef   : > { %351 = vmax.xlane.f32.xlu1 %v340_v17 }
  0xf0   : > { %347 = vmax.xlane.f32.xlu0 %v338_v18 }
  0xf3   : > { %355 = vmax.xlane.f32.xlu1 %v342_v19  ;;  %v427_v19 = vmax.f32 %v419_v1, 0.0 }
  0xf4   : > { %353 = vmax.xlane.f32.xlu0 %v341_v20  ;;  %v420_v20 = vsub.f32 1.0, %v806_v11  ;;  %v421_v11 = vsub.f32 1.0, %v811_v13 }
  0xf7   : > { %359 = vmax.xlane.f32.xlu1 %v344_v21 }
  0xf8   : > { %357 = vmax.xlane.f32.xlu0 %v343_v22 }
 0x178   : > { %v350_v23 = vpop.xlane.xlu1 %349 }
 0x179   : > { %v363_v24 = vsub.f32 1.0, %v350_v23  ;;  %v346_v25 = vpop.xlane.xlu0 %345  ;;  %v425_v23 = vmax.f32 %v417_v4, 0.0 }
 0x17a   : > { %v361_v26 = vsub.f32 1.0, %v346_v25 }
 0x17b   : > { %v371_v27 = vmax.f32 %v363_v24, 0.0  ;;  %v418_v24 = vsub.f32 1.0, %v813_v14  ;;  %v423_v14 = vsub.f32 1.0, %v804_v10 }
 0x17c   : > { %v369_v28 = vmax.f32 %v361_v26, 0.0  ;;  %v352_v29 = vpop.xlane.xlu1 %351 }
 0x17d   : > { %v379_v30 = vmul.f32 0.5, %v371_v27  ;;  %v364_v31 = vsub.f32 1.0, %v352_v29  ;;  %v348_v32 = vpop.xlane.xlu0 %347  ;;  %v422_v29 = vsub.f32 1.0, %v817_v16 }
 0x17e   : > { %v377_v33 = vmul.f32 0.5, %v369_v28  ;;  %v362_v34 = vsub.f32 1.0, %v348_v32  ;;  %v428_v28 = vmax.f32 %v420_v20, 0.0  ;;  %v426_v32 = vmax.f32 %v418_v24, 0.0 }
 0x17f   : > { %v387_v35 = vadd.f32 1e-05, %v379_v30  ;;  %v372_v36 = vmax.f32 %v364_v31, 0.0 }
 0x180   : > { %v385_v37 = vadd.f32 1e-05, %v377_v33  ;;  %v370_v38 = vmax.f32 %v362_v34, 0.0  ;;  %v356_v39 = vpop.xlane.xlu1 %355 }
 0x181   : > { %v395_v40 = vmul.f32 0.1, %v387_v35  ;;  %v380_v41 = vmul.f32 0.5, %v372_v36  ;;  %v366_v42 = vsub.f32 1.0, %v356_v39  ;;  %v354_v43 = vpop.xlane.xlu0 %353 }
 0x182   : > { %v393_v44 = vmul.f32 0.1, %v385_v37  ;;  %v378_v45 = vmul.f32 0.5, %v370_v38  ;;  %v365_v46 = vsub.f32 1.0, %v354_v43 }
 0x183   : > { %677 = vrcp.f32 %v395_v40  ;;  %v388_v47 = vadd.f32 1e-05, %v380_v41  ;;  %v374_v48 = vmax.f32 %v366_v42, 0.0  ;;  %v424_v41 = vsub.f32 1.0, %v815_v15 }
 0x184   : > { %679 = vrcp.f32 %v393_v44  ;;  %v386_v49 = vadd.f32 1e-05, %v378_v45  ;;  %v373_v50 = vmax.f32 %v365_v46, 0.0  ;;  %v360_v51 = vpop.xlane.xlu1 %359  ;;  %v430_v42 = vmax.f32 %v422_v29, 0.0 }
 0x185   : > { %v396_v52 = vmul.f32 0.1, %v388_v47  ;;  %v382_v53 = vmul.f32 0.5, %v374_v48  ;;  %v368_v54 = vsub.f32 1.0, %v360_v51  ;;  %v358_v55 = vpop.xlane.xlu0 %357  ;;  %v429_v44 = vmax.f32 %v421_v11, 0.0 }
 0x186   : > { %v394_v56 = vmul.f32 0.1, %v386_v49  ;;  %v381_v57 = vmul.f32 0.5, %v373_v50  ;;  %v367_v58 = vsub.f32 1.0, %v358_v55  ;;  %v432_v51 = vmax.f32 %v424_v41, 0.0 }
 0x187   : > { %681 = vrcp.f32 %v396_v52  ;;  %v390_v59 = vadd.f32 1e-05, %v382_v53  ;;  %v376_v60 = vmax.f32 %v368_v54, 0.0  ;;  %v431_v54 = vmax.f32 %v423_v14, 0.0 }
 0x188   : > { %683 = vrcp.f32 %v394_v56  ;;  %v389_v61 = vadd.f32 1e-05, %v381_v57  ;;  %v375_v62 = vmax.f32 %v367_v58, 0.0 }
 0x189   : > { %v398_v63 = vmul.f32 0.1, %v390_v59  ;;  %v384_v0 = vmul.f32 0.5, %v376_v60 }
 0x18a   : > { %v397_v2 = vmul.f32 0.1, %v389_v61  ;;  %v383_v3 = vmul.f32 0.5, %v375_v62 }
 0x18b   : > { %685 = vrcp.f32 %v398_v63  ;;  %v392_v5 = vadd.f32 1e-05, %v384_v0 }
 0x18c   : > { %687 = vrcp.f32 %v397_v2  ;;  %v391_v9 = vadd.f32 1e-05, %v383_v3 }
 0x18d   : > { %v678_v12 = vpop.eup %677  ;;  %v400_v17 = vmul.f32 0.1, %v392_v5 }
 0x18e   : > { %v680_v18 = vpop.eup %679  ;;  %v411_v21 = vmul.f32 0.5, %v678_v12  ;;  %v399_v22 = vmul.f32 0.1, %v391_v9 }
 0x18f   : > { %v409_v7 = vmul.f32 0.5, %v680_v18  ;;  %689 = vrcp.f32 %v400_v17 }
 0x190   : > { %v435_v25 = vmul.f32 %v427_v19, %v411_v21  ;;  %691 = vrcp.f32 %v399_v22 }
 0x191   : > { %v682_v8 = vpop.eup %681  ;;  %v433_v26 = vmul.f32 %v425_v23, %v409_v7 }
 0x192   : > { %v684_v27 = vpop.eup %683  ;;  %v443_v30 = vsub.f32 10.0, %v435_v25  ;;  %v412_v31 = vmul.f32 0.5, %v682_v8 }
 0x193   : > { %v441_v33 = vsub.f32 10.0, %v433_v26  ;;  %v410_v34 = vmul.f32 0.5, %v684_v27 }
 0x194   : > { %v436_v35 = vmul.f32 %v428_v28, %v412_v31  ;;  %v453_v37 = vmul.f32 1.442695, %v443_v30 }
 0x195   : > { %v686_v36 = vpop.eup %685  ;;  %v449_v38 = vmul.f32 1.442695, %v441_v33  ;;  %v434_v39 = vmul.f32 %v426_v32, %v410_v34 }
 0x196   : > { %v688_v40 = vpop.eup %687  ;;  %v444_v43 = vsub.f32 10.0, %v436_v35  ;;  %v414_v16 = vmul.f32 0.5, %v686_v36 }
 0x197   : > { %693 = vpow2.f32 %v449_v38  ;;  %v442_v45 = vsub.f32 10.0, %v434_v39  ;;  %v413_v46 = vmul.f32 0.5, %v688_v40 }
 0x198   : > { %v438_v13 = vmul.f32 %v430_v42, %v414_v16  ;;  %695 = vpow2.f32 %v453_v37  ;;  %v455_v48 = vmul.f32 1.442695, %v444_v43 }
 0x199   : > { %v690_v47 = vpop.eup %689  ;;  %v451_v49 = vmul.f32 1.442695, %v442_v45  ;;  %v437_v50 = vmul.f32 %v429_v44, %v413_v46 }
 0x19a   : > { %v692_v10 = vpop.eup %691  ;;  %v446_v52 = vsub.f32 10.0, %v438_v13  ;;  %v416_v53 = vmul.f32 0.5, %v690_v47 }
 0x19b   : > { %697 = vpow2.f32 %v451_v49  ;;  %v445_v15 = vsub.f32 10.0, %v437_v50  ;;  %v415_v55 = vmul.f32 0.5, %v692_v10 }
 0x19c   : > { %v440_v56 = vmul.f32 %v432_v51, %v416_v53  ;;  %699 = vpow2.f32 %v455_v48  ;;  %v459_v57 = vmul.f32 1.442695, %v446_v52 }
 0x19d   : > { %v457_v58 = vmul.f32 1.442695, %v445_v15  ;;  %v439_v59 = vmul.f32 %v431_v54, %v415_v55 }
 0x19e   : > { %v448_v60 = vsub.f32 10.0, %v440_v56 }
 0x19f   : > { %701 = vpow2.f32 %v457_v58  ;;  %v447_v61 = vsub.f32 10.0, %v439_v59 }
 0x1a0   : > { %703 = vpow2.f32 %v459_v57  ;;  %v463_v63 = vmul.f32 1.442695, %v448_v60 }
 0x1a1   : > { %v694_v62 = vpop.eup %693  ;;  %v461_v0 = vmul.f32 1.442695, %v447_v61 }
 0x1a2   : > { %v465_v1 = vsel %vm334_vm1, %v694_v62, 0.0  ;;  %v696_v2 = vpop.eup %695 }
 0x1a3   : > { %705 = vpow2.f32 %v461_v0  ;;  %473 = vadd.xlane.f32.xlu0 %v465_v1  ;;  %v467_v4 = vsel %vm334_vm1, %v696_v2, 0.0 }
 0x1a4   : > { %707 = vpow2.f32 %v463_v63 }
 0x1a5   : > { %v698_v3 = vpop.eup %697 }
 0x1a6   : > { %v466_v5 = vsel %vm334_vm1, %v698_v3, 0.0  ;;  %v700_v9 = vpop.eup %699 }
 0x1a7   : > { %477 = vadd.xlane.f32.xlu0 %v467_v4  ;;  %475 = vadd.xlane.f32.xlu1 %v466_v5  ;;  %v468_v17 = vsel %vm334_vm1, %v700_v9, 0.0 }
 0x1a9   : > { %v702_v12 = vpop.eup %701 }
 0x1aa   : > { %v469_v18 = vsel %vm334_vm1, %v702_v12, 0.0  ;;  %v704_v19 = vpop.eup %703 }
 0x1ab   : > { %479 = vadd.xlane.f32.xlu1 %v468_v17  ;;  %481 = vadd.xlane.f32.xlu0 %v469_v18  ;;  %v470_v21 = vsel %vm334_vm1, %v704_v19, 0.0 }
 0x1ad   : > { %v706_v20 = vpop.eup %705 }
 0x1ae   : > { %v471_v22 = vsel %vm334_vm1, %v706_v20, 0.0  ;;  %v708_v23 = vpop.eup %707 }
 0x1af   : > { %483 = vadd.xlane.f32.xlu1 %v470_v21  ;;  %485 = vadd.xlane.f32.xlu0 %v471_v22  ;;  %v472_v24 = vsel %vm334_vm1, %v708_v23, 0.0 }
 0x1b3   : > { %487 = vadd.xlane.f32.xlu1 %v472_v24 }
 0x230   : > { %v474_v7 = vpop.xlane.xlu0 %473 }
 0x231   : > { %709 = vrcp.f32 %v474_v7 }
 0x234   : > { %v476_v25 = vpop.xlane.xlu1 %475  ;;  %v478_v8 = vpop.xlane.xlu0 %477 }
 0x235   : > { %711 = vrcp.f32 %v476_v25 }
 0x236   : > { %713 = vrcp.f32 %v478_v8 }
 0x238   : > { %v480_v26 = vpop.xlane.xlu1 %479  ;;  %v482_v27 = vpop.xlane.xlu0 %481 }
 0x239   : > { %715 = vrcp.f32 %v480_v26 }
 0x23a   : > { %717 = vrcp.f32 %v482_v27 }
 0x23b   : > { %v710_v30 = vpop.eup %709 }
 0x23c   : > { %v484_v28 = vpop.xlane.xlu1 %483  ;;  %v486_v29 = vpop.xlane.xlu0 %485  ;;  %v497_v6 = vmul.f32 %v710_v30, %v694_v62 }
 0x23d   : > { %719 = vrcp.f32 %v484_v28 }
 0x23e   : > { %721 = vrcp.f32 %v486_v29 }
 0x23f   : > { %v712_v31 = vpop.eup %711 }
 0x240   : > { %v714_v32 = vpop.eup %713  ;;  %v498_v11 = vmul.f32 %v712_v31, %v698_v3  ;;  %v488_v33 = vpop.xlane.xlu1 %487 }
 0x241   : > { %723 = vrcp.f32 %v488_v33  ;;  %v499_v35 = vmul.f32 %v714_v32, %v696_v2 }
 0x242   : > { %v505_v34 = vmax.f32 %v497_v6, %v498_v11 }
 0x243   : > { %v716_v36 = vpop.eup %715 }
 0x244   : > { %v718_v14 = vpop.eup %717  ;;  %v506_v37 = vmax.f32 %v505_v34, %v499_v35  ;;  %v500_v38 = vmul.f32 %v716_v36, %v700_v9 }
 0x245   : > { %v501_v40 = vmul.f32 %v718_v14, %v702_v12 }
 0x246   : > { %v507_v39 = vmax.f32 %v506_v37, %v500_v38 }
 0x247   : > { %v720_v41 = vpop.eup %719 }
 0x248   : > { %v722_v42 = vpop.eup %721  ;;  %v508_v43 = vmax.f32 %v507_v39, %v501_v40  ;;  %v502_v16 = vmul.f32 %v720_v41, %v704_v19 }
 0x249   : > { %v503_v45 = vmul.f32 %v722_v42, %v706_v20 }
 0x24a   : > { %v509_v44 = vmax.f32 %v508_v43, %v502_v16 }
 0x24b   : > { %v724_v46 = vpop.eup %723 }
 0x24c   : > { %v510_v13 = vmax.f32 %v509_v44, %v503_v45  ;;  %v504_v47 = vmul.f32 %v724_v46, %v708_v23 }
 0x24e   : > { %v511_v48 = vmax.f32 %v510_v13, %v504_v47 }
 0x250   : > { %514 = vst [vmem:[%s211_s23] sm:$0xff] %v511_v48 }
 0x251 PF: > { %s12_s11 = sadd.s32 1, %s747_s11   ;;  %s878_s9 = smov %s743_s10 }
 0x252   : > { %p9_p5 = scmp.ge.s32.totalorder %s12_s11, 4   ;;  %s879_s10 = smov %s881_s12 }
 0x254   :  { %11 = sbr.rel (!%p9_p5) target bundleno = 2 (0x2), region = 65 }

</bundles_post_ra>
